<compile_context>
chip_gen: v6e
topology: v6e:2x2x1
jax: 0.10.0
libtpu: 0.0.40
codegen_flags: <defaults>
</compile_context>

<pallas_src>
import math

import numpy as np

import jax
import jax.numpy as jnp
from jax import lax
from jax.experimental import pallas as pl
from jax.experimental.pallas import tpu as pltpu

KERNEL_SIZE = 3
KERNEL_STRIDE = 2
PADDING = KERNEL_SIZE // 2
BN_EPS = 1e-5
SUBLANE = 8
LANE = 128


def _round_up(x, m):
    return ((x + m - 1) // m) * m


def _zero_map(ndim):
    return lambda i: (0,) * ndim


# --------------------------------------------------------------------------
# Host-side (init-time) builders.  Activation layout:
#     X2d[(n*H + h), (w*C + c)]  ==  x_nchw[n, c, h, w],  lanes padded to WCP.
# --------------------------------------------------------------------------

def _conv_row_select(h_out, h_in):
    """S[kh][ho, h] = 1  iff  h == stride*ho + kh - pad  (zero pad folded in)."""
    s = np.zeros((KERNEL_SIZE, h_out, h_in), np.float32)
    for kh in range(KERNEL_SIZE):
        for ho in range(h_out):
            h = KERNEL_STRIDE * ho + kh - PADDING
            if 0 <= h < h_in:
                s[kh, ho, h] = 1.0
    return s


def _convT_row_select(h_out, h_in):
    """S[kh][ho, h] = 1  iff  ho == stride*h + kh - pad  (transposed conv)."""
    s = np.zeros((KERNEL_SIZE, h_out, h_in), np.float32)
    for kh in range(KERNEL_SIZE):
        for h in range(h_in):
            ho = KERNEL_STRIDE * h + kh - PADDING
            if 0 <= ho < h_out:
                s[kh, ho, h] = 1.0
    return s


def _conv_col_weights_cat(w_in, w_out, weight, wcp):
    """Vertically stacked [B0;B1;B2]; B_kh[(w*Cin+ci),(wo*Cout+co)] = W[co,ci,kh,kw]."""
    cout, cin = weight.shape[0], weight.shape[1]
    b = np.zeros((KERNEL_SIZE * wcp, wcp), np.float32)
    for kh in range(KERNEL_SIZE):
        base = kh * wcp
        for wo in range(w_out):
            for kw in range(KERNEL_SIZE):
                w = KERNEL_STRIDE * wo + kw - PADDING
                if 0 <= w < w_in:
                    b[base + w * cin: base + (w + 1) * cin,
                      wo * cout:(wo + 1) * cout] = weight[:, :, kh, kw].T
    return b


def _convT_col_weights_cat(w_in, w_out, weight, wcp):
    """Horizontally stacked [B0|B1|B2]; B_kh[(w*Ctop+ci),(wo*Cbot+co)] = W[ci,co,kh,kw]."""
    ctop, cbot = weight.shape[0], weight.shape[1]
    b = np.zeros((wcp, KERNEL_SIZE * wcp), np.float32)
    for kh in range(KERNEL_SIZE):
        base = kh * wcp
        for w in range(w_in):
            for kw in range(KERNEL_SIZE):
                wo = KERNEL_STRIDE * w + kw - PADDING
                if 0 <= wo < w_out:
                    b[w * ctop:(w + 1) * ctop,
                      base + wo * cbot: base + (wo + 1) * cbot] = weight[:, :, kh, kw]
    return b


def _channel_pool(w, c, wcp):
    """P[(wi*c + ci), ci] = 1 for wi < w : reduces the W sub-axis of the lanes."""
    p = np.zeros((wcp, c), np.float32)
    for wi in range(w):
        p[wi * c:(wi + 1) * c, :] = np.eye(c, dtype=np.float32)
    return p


def _lane_row(vec, w, wcp):
    """Per-channel vector tiled over the W sub-axis of the (w*C) lane layout."""
    row = np.zeros((1, wcp), np.float32)
    row[0, : w * vec.shape[0]] = np.tile(vec, w)
    return row


def _pad_lane_vec(vec, wcp):
    row = np.zeros((1, wcp), np.float32)
    row[0, : vec.shape[0]] = vec
    return row


class _VecSlab:
    """Packs many tiny constants into one (R, wcp) f32 array with 8-row-aligned
    offsets so every in-kernel read is an aligned static sublane slice."""

    def __init__(self, wcp):
        self.wcp = wcp
        self.blocks = []
        self.index = {}
        self.cursor = 0

    def put(self, name, mat):
        mat = np.asarray(mat, np.float32)
        if mat.ndim == 1:
            mat = mat[None, :]
        r, c = mat.shape
        rp = _round_up(r, SUBLANE)
        blk = np.zeros((rp, self.wcp), np.float32)
        blk[:r, :c] = mat
        self.index[name] = (self.cursor, r)
        self.blocks.append(blk)
        self.cursor += rp

    def build(self):
        return np.concatenate(self.blocks, axis=0)


def _nchw_to_2d(x, wcp):
    n, c, h, w = x.shape
    x2 = x.transpose(0, 2, 3, 1).reshape(n * h, w * c)
    if w * c < wcp:
        x2 = jnp.pad(x2, ((0, 0), (0, wcp - w * c)))
    return x2


def _2d_to_nchw(x2d, n, c, h, w):
    return x2d[:, : w * c].reshape(n, h, w, c).transpose(0, 3, 1, 2)


# --------------------------------------------------------------------------
# Model
# --------------------------------------------------------------------------

class Model01Pallas:
    def __init__(self, network_size, input_spatial_size, key):
        self.network_size = tuple(network_size)
        self.hidden_layers = len(network_size) - 2
        self.activation_size = [tuple(input_spatial_size)]
        for layer in range(self.hidden_layers):
            self.activation_size.append(
                tuple(math.ceil(s / 2) for s in self.activation_size[layer]))

        nh = self.hidden_layers
        ns = self.network_size
        act = self.activation_size
        # One global lane-dense padded width for every level (W*C <= WCP).
        self.wcp = max(LANE, max(_round_up(w * c, LANE)
                                 for (h, w), c in zip(act, ns[: nh + 1])))
        wcp = self.wcp

        keys = jax.random.split(key, 4 * nh + 2)
        ki = 0
        slab = _VecSlab(wcp)
        consts = {}
        for l in range(nh):
            cin, cout = ns[l], ns[l + 1]
            h_lo, w_lo = act[l]        # shallower level l
            h_hi, w_hi = act[l + 1]    # deeper level l+1

            d_w = 0.1 * jax.random.normal(
                keys[ki], (cout, cin, KERNEL_SIZE, KERNEL_SIZE), jnp.float32); ki += 1
            d_b = 0.01 * jax.random.normal(keys[ki], (cout,), jnp.float32); ki += 1
            g_w = 0.1 * jax.random.normal(
                keys[ki], (cout, cin, KERNEL_SIZE, KERNEL_SIZE), jnp.float32); ki += 1
            g_b = 0.01 * jax.random.normal(keys[ki], (cin,), jnp.float32); ki += 1
            d_w_np, d_b_np = np.asarray(d_w), np.asarray(d_b)
            g_w_np, g_b_np = np.asarray(g_w), np.asarray(g_b)

            # bf16 structure / folded-weight matrices (f32 accumulation in-kernel)
            consts[f"enc_B{l}"] = jnp.asarray(
                _conv_col_weights_cat(w_lo, w_hi, d_w_np, wcp), jnp.bfloat16)
            consts[f"dec_B{l}"] = jnp.asarray(
                _convT_col_weights_cat(w_hi, w_lo, g_w_np, wcp), jnp.bfloat16)
            consts[f"enc_P{l}"] = jnp.asarray(_channel_pool(w_hi, cout, wcp))
            consts[f"dec_P{l}"] = jnp.asarray(_channel_pool(w_lo, cin, wcp))

            slab.put(f"enc_bias{l}", _lane_row(d_b_np, w_hi, wcp))
            slab.put(f"enc_gb{l}", np.concatenate(
                [_pad_lane_vec(np.ones(cout, np.float32), wcp),
                 _pad_lane_vec(np.zeros(cout, np.float32), wcp)], axis=0))
            slab.put(f"enc_PT{l}", _channel_pool(w_hi, cout, wcp).T)
            slab.put(f"dec_bias{l}", _lane_row(g_b_np, w_lo, wcp))
            slab.put(f"dec_gb{l}", np.concatenate(
                [_pad_lane_vec(np.ones(cin, np.float32), wcp),
                 _pad_lane_vec(np.zeros(cin, np.float32), wcp)], axis=0))
            slab.put(f"dec_PT{l}", _channel_pool(w_lo, cin, wcp).T)

        emb, nvid = ns[-2], ns[-1]
        stab_w = 0.1 * jax.random.normal(keys[ki], (nvid, emb), jnp.float32); ki += 1
        stab_b = 0.01 * jax.random.normal(keys[ki], (nvid,), jnp.float32)
        stab_wT = np.zeros((emb, wcp), np.float32)
        stab_wT[:, :nvid] = np.asarray(stab_w).T
        slab.put("stab_wT", stab_wT)
        slab.put("stab_b", _pad_lane_vec(np.asarray(stab_b), wcp))

        consts["vecs"] = jnp.asarray(slab.build())
        self.vec_rows = dict(slab.index)
        self.consts = consts
        self._batch_cache = {}   # batch-size dependent row-selection matrices

    def _batch_consts(self, n):
        if n in self._batch_cache:
            return self._batch_cache[n]
        eye = np.eye(n, dtype=np.float32)
        bc = {}
        for l in range(self.hidden_layers):
            h_lo = self.activation_size[l][0]
            h_hi = self.activation_size[l + 1][0]
            s_enc = _conv_row_select(h_hi, h_lo)    # (3, h_hi, h_lo)
            s_dec = _convT_row_select(h_lo, h_hi)   # (3, h_lo, h_hi)
            # TODO(synk): for large batch, shard a per-sample "parallel" grid axis
            # across the v7x megacore instead of block-diagonal kron selectors.
            bc[f"enc_S{l}"] = jnp.asarray(np.concatenate(
                [np.kron(eye, s_enc[k]) for k in range(KERNEL_SIZE)], axis=0),
                jnp.bfloat16)                       # (3*n*h_hi, n*h_lo)
            bc[f"dec_S{l}"] = jnp.asarray(np.concatenate(
                [np.kron(eye, s_dec[k]) for k in range(KERNEL_SIZE)], axis=1),
                jnp.bfloat16)                       # (n*h_lo, 3*n*h_hi)
        h_last = self.activation_size[-1][0]
        bc["r_pool"] = jnp.asarray(
            np.kron(eye, np.full((1, h_last), 1.0 / h_last, np.float32)))
        self._batch_cache[n] = bc
        return bc

    def __call__(self, x, state):
        nh = self.hidden_layers
        ns = self.network_size
        act = self.activation_size
        wcp = self.wcp
        n = x.shape[0]
        has_state = bool(state)
        bc = self._batch_consts(n)
        consts = self.consts
        vec_rows = self.vec_rows
        emb, nvid = ns[-2], ns[-1]

        # ---- kernel input assembly (layout conversion only at the boundary) ----
        inputs = []
        idx = {}

        def add(name, arr):
            idx[name] = len(inputs)
            inputs.append(arr)

        add("x", _nchw_to_2d(x, wcp))
        if has_state:
            for l in range(nh - 1):
                add(f"state{l}", _nchw_to_2d(state[l], wcp))
        for l in range(nh):
            add(f"enc_S{l}", bc[f"enc_S{l}"])
            add(f"enc_B{l}", consts[f"enc_B{l}"])
            add(f"enc_P{l}", consts[f"enc_P{l}"])
            add(f"dec_S{l}", bc[f"dec_S{l}"])
            add(f"dec_B{l}", consts[f"dec_B{l}"])
            add(f"dec_P{l}", consts[f"dec_P{l}"])
        add("r_pool", bc["r_pool"])
        add("vecs", consts["vecs"])

        n_in = len(inputs)

        out_shapes = [jax.ShapeDtypeStruct((n * act[0][0], wcp), jnp.float32)]  # final x
        for l in range(nh - 1):                                                 # new state
            out_shapes.append(jax.ShapeDtypeStruct((n * act[l + 1][0], wcp), jnp.float32))
        out_shapes.append(jax.ShapeDtypeStruct((n, emb), jnp.float32))          # pooled
        out_shapes.append(jax.ShapeDtypeStruct((n, wcp), jnp.float32))          # video (padded)

        cnt_enc = [float(n * act[l + 1][0] * act[l + 1][1]) for l in range(nh)]
        cnt_dec = [float(n * act[l][0] * act[l][1]) for l in range(nh)]
        nrows = [n * act[l][0] for l in range(nh + 1)]      # rows per level
        inv_w_last = 1.0 / float(act[-1][1])

        # ------------------------- the fused mega-kernel -------------------------
        def kernel(*refs):
            in_refs = refs[:n_in]
            out_refs = refs[n_in:]
            vecs_ref = in_refs[idx["vecs"]]

            def vrow(name):
                off, cnt = vec_rows[name]
                return vecs_ref[pl.ds(off, cnt), :]

            def fload(name):
                return in_refs[idx[name]][...].astype(jnp.float32)

            def relu_bn(pre, prefix, l, count, c):
                # ReLU then training-mode BatchNorm as y*scale + shift.
                y = jnp.maximum(pre, 0.0)
                sums = jnp.concatenate(
                    [jnp.sum(y, axis=0, keepdims=True),
                     jnp.sum(y * y, axis=0, keepdims=True)], axis=0)        # (2, wcp)
                stats = jnp.dot(sums, in_refs[idx[f"{prefix}_P{l}"]][...],
                                preferred_element_type=jnp.float32) * (1.0 / count)
                mean = stats[0:1]
                var = jnp.maximum(stats[1:2] - mean * mean, 0.0)
                gb = vrow(f"{prefix}_gb{l}")                                 # (2, wcp)
                scale = gb[0:1, :c] * lax.rsqrt(var + BN_EPS)
                shift = gb[1:2, :c] - mean * scale
                sc_sh = jnp.dot(jnp.concatenate([scale, shift], axis=0),
                                vrow(f"{prefix}_PT{l}"),
                                preferred_element_type=jnp.float32)          # (2, wcp)
                return y * sc_sh[0:1] + sc_sh[1:2]

            x2d = in_refs[idx["x"]][...]
            residuals = []
            # ---------------- encoder (2 MXU dots / layer) ----------------
            for l in range(nh):
                r_hi = nrows[l + 1]
                t = jnp.dot(fload(f"enc_S{l}"), x2d,
                            preferred_element_type=jnp.float32)       # (3*r_hi, wcp)
                xcat = jnp.concatenate(
                    [t[0:r_hi], t[r_hi:2 * r_hi], t[2 * r_hi:3 * r_hi]], axis=1)
                pre = jnp.dot(xcat, fload(f"enc_B{l}"),
                              preferred_element_type=jnp.float32) + vrow(f"enc_bias{l}")
                if l < nh - 1 and has_state:
                    pre = pre + in_refs[idx[f"state{l}"]][...]   # fused skip-add
                residuals.append(pre)                            # aliases summed tensor
                x2d = relu_bn(pre, "enc", l, cnt_enc[l], ns[l + 1])
            # ---------------- decoder (2 MXU dots / layer, B before S) ----------------
            for l in reversed(range(nh)):
                y = jnp.dot(x2d, fload(f"dec_B{l}"),
                            preferred_element_type=jnp.float32)       # (r_hi, 3*wcp)
                yrows = jnp.concatenate(
                    [y[:, 0:wcp], y[:, wcp:2 * wcp], y[:, 2 * wcp:3 * wcp]], axis=0)
                pre = jnp.dot(fload(f"dec_S{l}"), yrows,
                              preferred_element_type=jnp.float32) + vrow(f"dec_bias{l}")
                if l:
                    pre = pre + residuals[l - 1]
                    out_refs[l][...] = pre            # new state (aliases the sum)
                x2d = relu_bn(pre, "dec", l, cnt_dec[l], ns[l])
            out_refs[0][...] = x2d
            # ------------- classifier: global avg pool + linear -------------
            pooled = jnp.dot(
                jnp.dot(in_refs[idx["r_pool"]][...], residuals[nh - 1],
                        preferred_element_type=jnp.float32),
                in_refs[idx[f"enc_P{nh - 1}"]][...],
                preferred_element_type=jnp.float32) * inv_w_last
            out_refs[nh][...] = pooled
            out_refs[nh + 1][...] = (
                jnp.dot(pooled, vrow("stab_wT"),
                        preferred_element_type=jnp.float32) + vrow("stab_b"))

        in_specs = [pl.BlockSpec(a.shape, _zero_map(a.ndim)) for a in inputs]
        out_specs = tuple(pl.BlockSpec(s.shape, _zero_map(len(s.shape)))
                          for s in out_shapes)

        outs = pl.pallas_call(
            kernel,
            grid=(1,),
            in_specs=in_specs,
            out_specs=out_specs,
            out_shape=tuple(out_shapes),
            compiler_params=pltpu.CompilerParams(
                dimension_semantics=("arbitrary",),
                vmem_limit_bytes=32 * 1024 * 1024),
        )(*inputs)

        # ---- boundary conversions back to the PyTorch NCHW interface ----
        x_out = _2d_to_nchw(outs[0], n, ns[0], act[0][0], act[0][1])
        new_state = [
            _2d_to_nchw(outs[1 + l], n, ns[l + 1], act[l + 1][0], act[l + 1][1])
            for l in range(nh - 1)
        ]
        x_mean = outs[nh].reshape(n, emb, 1, 1)
        video_index = outs[nh + 1][:, :nvid]
        return (x_out, new_state), (x_mean, video_index)


# --------------------------------------------------------------------------
# main
# --------------------------------------------------------------------------

if __name__ == "__main__":
    key = jax.random.PRNGKey(0)
    k_param, k_x = jax.random.split(key)

    # network_size = (n_channels, h1, emb_size, nb_videos) -> 2 hidden layers
    network_size = (4, 8, 16, 10)
    input_spatial = (16, 16)
    model = Model01Pallas(network_size, input_spatial, k_param)

    x = jax.random.normal(k_x, (2, 4, 16, 16), jnp.float32)

    # First call: no state (zero-skip branches are compiled out entirely).
    (out_x, state), (x_mean, video_index) = model(x, None)
    jax.block_until_ready((out_x, state, x_mean, video_index))

    assert out_x.shape == (2, 4, 16, 16)
    assert len(state) == 1 and state[0].shape == (2, 8, 8, 8)
    assert x_mean.shape == (2, 16, 1, 1)
    assert video_index.shape == (2, 10)
    assert all(bool(jnp.all(jnp.isfinite(t)))
               for t in (out_x, state[0], x_mean, video_index))

    # Second call: feed the returned state back (exercises the skip-add path).
    (out_x2, state2), (x_mean2, video_index2) = model(x, state)
    jax.block_until_ready((out_x2, state2, x_mean2, video_index2))
    assert out_x2.shape == (2, 4, 16, 16)
    assert state2[0].shape == (2, 8, 8, 8)
    assert all(bool(jnp.all(jnp.isfinite(t)))
               for t in (out_x2, state2[0], x_mean2, video_index2))

    print("KERNEL_OK")
</pallas_src>

<mosaic_0001>
module attributes {stable_mosaic.version = 11 : i64} {
  func.func @kernel(%arg0: i32, %arg1: memref<32x128xf32, #tpu.memory_space<vmem>>, %arg2: memref<48x32xbf16, #tpu.memory_space<vmem>>, %arg3: memref<384x128xbf16, #tpu.memory_space<vmem>>, %arg4: memref<128x8xf32, #tpu.memory_space<vmem>>, %arg5: memref<32x48xbf16, #tpu.memory_space<vmem>>, %arg6: memref<128x384xbf16, #tpu.memory_space<vmem>>, %arg7: memref<128x4xf32, #tpu.memory_space<vmem>>, %arg8: memref<24x16xbf16, #tpu.memory_space<vmem>>, %arg9: memref<384x128xbf16, #tpu.memory_space<vmem>>, %arg10: memref<128x16xf32, #tpu.memory_space<vmem>>, %arg11: memref<16x24xbf16, #tpu.memory_space<vmem>>, %arg12: memref<128x384xbf16, #tpu.memory_space<vmem>>, %arg13: memref<128x8xf32, #tpu.memory_space<vmem>>, %arg14: memref<2x8xf32, #tpu.memory_space<vmem>>, %arg15: memref<128x128xf32, #tpu.memory_space<vmem>>, %arg16: memref<32x128xf32, #tpu.memory_space<vmem>>, %arg17: memref<16x128xf32, #tpu.memory_space<vmem>>, %arg18: memref<2x16xf32, #tpu.memory_space<vmem>>, %arg19: memref<2x128xf32, #tpu.memory_space<vmem>>) attributes {dimension_semantics = [#tpu.dimension_semantics<arbitrary>], iteration_bounds = array<i64: 1>, scalar_prefetch = 0 : i64, scratch_operands = 0 : i64, tpu.core_type = #tpu.core_type<tc>, window_params = [{pipeline_mode = #tpu.pipeline_mode<synchronous>, transform_indices = @transform_0, window_bounds = array<i64: 32, 128>}, {pipeline_mode = #tpu.pipeline_mode<synchronous>, transform_indices = @transform_1, window_bounds = array<i64: 48, 32>}, {pipeline_mode = #tpu.pipeline_mode<synchronous>, transform_indices = @transform_2, window_bounds = array<i64: 384, 128>}, {pipeline_mode = #tpu.pipeline_mode<synchronous>, transform_indices = @transform_3, window_bounds = array<i64: 128, 8>}, {pipeline_mode = #tpu.pipeline_mode<synchronous>, transform_indices = @transform_4, window_bounds = array<i64: 32, 48>}, {pipeline_mode = #tpu.pipeline_mode<synchronous>, transform_indices = @transform_5, window_bounds = array<i64: 128, 384>}, {pipeline_mode = #tpu.pipeline_mode<synchronous>, transform_indices = @transform_6, window_bounds = array<i64: 128, 4>}, {pipeline_mode = #tpu.pipeline_mode<synchronous>, transform_indices = @transform_7, window_bounds = array<i64: 24, 16>}, {pipeline_mode = #tpu.pipeline_mode<synchronous>, transform_indices = @transform_8, window_bounds = array<i64: 384, 128>}, {pipeline_mode = #tpu.pipeline_mode<synchronous>, transform_indices = @transform_9, window_bounds = array<i64: 128, 16>}, {pipeline_mode = #tpu.pipeline_mode<synchronous>, transform_indices = @transform_10, window_bounds = array<i64: 16, 24>}, {pipeline_mode = #tpu.pipeline_mode<synchronous>, transform_indices = @transform_11, window_bounds = array<i64: 128, 384>}, {pipeline_mode = #tpu.pipeline_mode<synchronous>, transform_indices = @transform_12, window_bounds = array<i64: 128, 8>}, {pipeline_mode = #tpu.pipeline_mode<synchronous>, transform_indices = @transform_13, window_bounds = array<i64: 2, 8>}, {pipeline_mode = #tpu.pipeline_mode<synchronous>, transform_indices = @transform_14, window_bounds = array<i64: 128, 128>}, {pipeline_mode = #tpu.pipeline_mode<synchronous>, transform_indices = @transform_15, window_bounds = array<i64: 32, 128>}, {pipeline_mode = #tpu.pipeline_mode<synchronous>, transform_indices = @transform_16, window_bounds = array<i64: 16, 128>}, {pipeline_mode = #tpu.pipeline_mode<synchronous>, transform_indices = @transform_17, window_bounds = array<i64: 2, 16>}, {pipeline_mode = #tpu.pipeline_mode<synchronous>, transform_indices = @transform_18, window_bounds = array<i64: 2, 128>}]} {
    %c0 = arith.constant 0 : index
    %c0_0 = arith.constant 0 : index
    %0 = vector.load %arg1[%c0, %c0_0] : memref<32x128xf32, #tpu.memory_space<vmem>>, vector<32x128xf32>
    %c0_1 = arith.constant 0 : index
    %c0_2 = arith.constant 0 : index
    %1 = vector.load %arg2[%c0_1, %c0_2] : memref<48x32xbf16, #tpu.memory_space<vmem>>, vector<48x32xbf16>
    %2 = arith.extf %1 : vector<48x32xbf16> to vector<48x32xf32>
    %cst = arith.constant dense<0.000000e+00> : vector<48x128xf32>
    %3 = tpu.matmul %2, %0, %cst {dimension_numbers = #tpu.dot_dimension_numbers<[1], [0], [0], [1], [0, 0, 1, 1], [], []>} : vector<48x32xf32>, vector<32x128xf32>, vector<48x128xf32> -> vector<48x128xf32>
    %4 = vector.extract_strided_slice %3 {offsets = [0, 0], sizes = [16, 128], strides = [1, 1]} : vector<48x128xf32> to vector<16x128xf32>
    %5 = vector.extract_strided_slice %3 {offsets = [16, 0], sizes = [16, 128], strides = [1, 1]} : vector<48x128xf32> to vector<16x128xf32>
    %6 = vector.extract_strided_slice %3 {offsets = [32, 0], sizes = [16, 128], strides = [1, 1]} : vector<48x128xf32> to vector<16x128xf32>
    %7 = tpu.concatenate %4, %5, %6 in 1 : vector<16x128xf32>, vector<16x128xf32>, vector<16x128xf32> -> vector<16x384xf32>
    %c0_3 = arith.constant 0 : index
    %c0_4 = arith.constant 0 : index
    %8 = vector.load %arg3[%c0_3, %c0_4] : memref<384x128xbf16, #tpu.memory_space<vmem>>, vector<384x128xbf16>
    %9 = arith.extf %8 : vector<384x128xbf16> to vector<384x128xf32>
    %cst_5 = arith.constant dense<0.000000e+00> : vector<16x128xf32>
    %10 = tpu.matmul %7, %9, %cst_5 {dimension_numbers = #tpu.dot_dimension_numbers<[1], [0], [0], [1], [0, 0, 1, 1], [], []>} : vector<16x384xf32>, vector<384x128xf32>, vector<16x128xf32> -> vector<16x128xf32>
    %c0_6 = arith.constant 0 : index
    %c0_7 = arith.constant 0 : index
    %11 = vector.load %arg15[%c0_6, %c0_7] : memref<128x128xf32, #tpu.memory_space<vmem>>, vector<1x128xf32>
    %12 = vector.broadcast %11 : vector<1x128xf32> to vector<16x128xf32>
    %13 = arith.addf %10, %12 : vector<16x128xf32>
    %cst_8 = arith.constant 0.000000e+00 : f32
    %14 = vector.broadcast %cst_8 : f32 to vector<16x128xf32>
    %15 = arith.maximumf %13, %14 : vector<16x128xf32>
    %cst_9 = arith.constant dense<0.000000e+00> : vector<128xf32>
    %16 = vector.multi_reduction <add>, %15, %cst_9 [0] : vector<16x128xf32> to vector<128xf32>
    %17 = vector.shape_cast %16 : vector<128xf32> to vector<1x128xf32>
    %18 = arith.mulf %15, %15 : vector<16x128xf32>
    %cst_10 = arith.constant dense<0.000000e+00> : vector<128xf32>
    %19 = vector.multi_reduction <add>, %18, %cst_10 [0] : vector<16x128xf32> to vector<128xf32>
    %20 = vector.shape_cast %19 : vector<128xf32> to vector<1x128xf32>
    %21 = tpu.concatenate %17, %20 in 0 : vector<1x128xf32>, vector<1x128xf32> -> vector<2x128xf32>
    %c0_11 = arith.constant 0 : index
    %c0_12 = arith.constant 0 : index
    %22 = vector.load %arg4[%c0_11, %c0_12] : memref<128x8xf32, #tpu.memory_space<vmem>>, vector<128x8xf32>
    %cst_13 = arith.constant dense<0.000000e+00> : vector<2x8xf32>
    %23 = tpu.matmul %21, %22, %cst_13 {dimension_numbers = #tpu.dot_dimension_numbers<[1], [0], [0], [1], [0, 0, 1, 1], [], []>} : vector<2x128xf32>, vector<128x8xf32>, vector<2x8xf32> -> vector<2x8xf32>
    %cst_14 = arith.constant 7.812500e-03 : f32
    %24 = vector.broadcast %cst_14 : f32 to vector<2x8xf32>
    %25 = arith.mulf %23, %24 : vector<2x8xf32>
    %26 = vector.extract_strided_slice %25 {offsets = [0, 0], sizes = [1, 8], strides = [1, 1]} : vector<2x8xf32> to vector<1x8xf32>
    %27 = vector.extract_strided_slice %25 {offsets = [1, 0], sizes = [1, 8], strides = [1, 1]} : vector<2x8xf32> to vector<1x8xf32>
    %28 = arith.mulf %26, %26 : vector<1x8xf32>
    %29 = arith.subf %27, %28 : vector<1x8xf32>
    %cst_15 = arith.constant 0.000000e+00 : f32
    %30 = vector.broadcast %cst_15 : f32 to vector<1x8xf32>
    %31 = arith.maximumf %29, %30 : vector<1x8xf32>
    %c8 = arith.constant 8 : index
    %c0_16 = arith.constant 0 : index
    %32 = vector.load %arg15[%c8, %c0_16] : memref<128x128xf32, #tpu.memory_space<vmem>>, vector<2x128xf32>
    %33 = vector.extract_strided_slice %32 {offsets = [0, 0], sizes = [1, 8], strides = [1, 1]} : vector<2x128xf32> to vector<1x8xf32>
    %cst_17 = arith.constant 9.99999974E-6 : f32
    %34 = vector.broadcast %cst_17 : f32 to vector<1x8xf32>
    %35 = arith.addf %31, %34 : vector<1x8xf32>
    %36 = math.rsqrt %35 : vector<1x8xf32>
    %37 = arith.mulf %33, %36 : vector<1x8xf32>
    %38 = vector.extract_strided_slice %32 {offsets = [1, 0], sizes = [1, 8], strides = [1, 1]} : vector<2x128xf32> to vector<1x8xf32>
    %39 = arith.mulf %26, %37 : vector<1x8xf32>
    %40 = arith.subf %38, %39 : vector<1x8xf32>
    %41 = tpu.concatenate %37, %40 in 0 : vector<1x8xf32>, vector<1x8xf32> -> vector<2x8xf32>
    %c16 = arith.constant 16 : index
    %c0_18 = arith.constant 0 : index
    %42 = vector.load %arg15[%c16, %c0_18] : memref<128x128xf32, #tpu.memory_space<vmem>>, vector<8x128xf32>
    %cst_19 = arith.constant dense<0.000000e+00> : vector<2x128xf32>
    %43 = tpu.matmul %41, %42, %cst_19 {dimension_numbers = #tpu.dot_dimension_numbers<[1], [0], [0], [1], [0, 0, 1, 1], [], []>} : vector<2x8xf32>, vector<8x128xf32>, vector<2x128xf32> -> vector<2x128xf32>
    %44 = vector.extract_strided_slice %43 {offsets = [0, 0], sizes = [1, 128], strides = [1, 1]} : vector<2x128xf32> to vector<1x128xf32>
    %45 = vector.broadcast %44 : vector<1x128xf32> to vector<16x128xf32>
    %46 = arith.mulf %15, %45 : vector<16x128xf32>
    %47 = vector.extract_strided_slice %43 {offsets = [1, 0], sizes = [1, 128], strides = [1, 1]} : vector<2x128xf32> to vector<1x128xf32>
    %48 = vector.broadcast %47 : vector<1x128xf32> to vector<16x128xf32>
    %49 = arith.addf %46, %48 : vector<16x128xf32>
    %c0_20 = arith.constant 0 : index
    %c0_21 = arith.constant 0 : index
    %50 = vector.load %arg8[%c0_20, %c0_21] : memref<24x16xbf16, #tpu.memory_space<vmem>>, vector<24x16xbf16>
    %51 = arith.extf %50 : vector<24x16xbf16> to vector<24x16xf32>
    %cst_22 = arith.constant dense<0.000000e+00> : vector<24x128xf32>
    %52 = tpu.matmul %51, %49, %cst_22 {dimension_numbers = #tpu.dot_dimension_numbers<[1], [0], [0], [1], [0, 0, 1, 1], [], []>} : vector<24x16xf32>, vector<16x128xf32>, vector<24x128xf32> -> vector<24x128xf32>
    %53 = vector.extract_strided_slice %52 {offsets = [0, 0], sizes = [8, 128], strides = [1, 1]} : vector<24x128xf32> to vector<8x128xf32>
    %54 = vector.extract_strided_slice %52 {offsets = [8, 0], sizes = [8, 128], strides = [1, 1]} : vector<24x128xf32> to vector<8x128xf32>
    %55 = vector.extract_strided_slice %52 {offsets = [16, 0], sizes = [8, 128], strides = [1, 1]} : vector<24x128xf32> to vector<8x128xf32>
    %56 = tpu.concatenate %53, %54, %55 in 1 : vector<8x128xf32>, vector<8x128xf32>, vector<8x128xf32> -> vector<8x384xf32>
    %c0_23 = arith.constant 0 : index
    %c0_24 = arith.constant 0 : index
    %57 = vector.load %arg9[%c0_23, %c0_24] : memref<384x128xbf16, #tpu.memory_space<vmem>>, vector<384x128xbf16>
    %58 = arith.extf %57 : vector<384x128xbf16> to vector<384x128xf32>
    %cst_25 = arith.constant dense<0.000000e+00> : vector<8x128xf32>
    %59 = tpu.matmul %56, %58, %cst_25 {dimension_numbers = #tpu.dot_dimension_numbers<[1], [0], [0], [1], [0, 0, 1, 1], [], []>} : vector<8x384xf32>, vector<384x128xf32>, vector<8x128xf32> -> vector<8x128xf32>
    %c48 = arith.constant 48 : index
    %c0_26 = arith.constant 0 : index
    %60 = vector.load %arg15[%c48, %c0_26] : memref<128x128xf32, #tpu.memory_space<vmem>>, vector<1x128xf32>
    %61 = vector.broadcast %60 : vector<1x128xf32> to vector<8x128xf32>
    %62 = arith.addf %59, %61 : vector<8x128xf32>
    %cst_27 = arith.constant 0.000000e+00 : f32
    %63 = vector.broadcast %cst_27 : f32 to vector<8x128xf32>
    %64 = arith.maximumf %62, %63 : vector<8x128xf32>
    %cst_28 = arith.constant dense<0.000000e+00> : vector<128xf32>
    %65 = vector.multi_reduction <add>, %64, %cst_28 [0] : vector<8x128xf32> to vector<128xf32>
    %66 = vector.shape_cast %65 : vector<128xf32> to vector<1x128xf32>
    %67 = arith.mulf %64, %64 : vector<8x128xf32>
    %cst_29 = arith.constant dense<0.000000e+00> : vector<128xf32>
    %68 = vector.multi_reduction <add>, %67, %cst_29 [0] : vector<8x128xf32> to vector<128xf32>
    %69 = vector.shape_cast %68 : vector<128xf32> to vector<1x128xf32>
    %70 = tpu.concatenate %66, %69 in 0 : vector<1x128xf32>, vector<1x128xf32> -> vector<2x128xf32>
    %c0_30 = arith.constant 0 : index
    %c0_31 = arith.constant 0 : index
    %71 = vector.load %arg10[%c0_30, %c0_31] : memref<128x16xf32, #tpu.memory_space<vmem>>, vector<128x16xf32>
    %cst_32 = arith.constant dense<0.000000e+00> : vector<2x16xf32>
    %72 = tpu.matmul %70, %71, %cst_32 {dimension_numbers = #tpu.dot_dimension_numbers<[1], [0], [0], [1], [0, 0, 1, 1], [], []>} : vector<2x128xf32>, vector<128x16xf32>, vector<2x16xf32> -> vector<2x16xf32>
    %cst_33 = arith.constant 3.125000e-02 : f32
    %73 = vector.broadcast %cst_33 : f32 to vector<2x16xf32>
    %74 = arith.mulf %72, %73 : vector<2x16xf32>
    %75 = vector.extract_strided_slice %74 {offsets = [0, 0], sizes = [1, 16], strides = [1, 1]} : vector<2x16xf32> to vector<1x16xf32>
    %76 = vector.extract_strided_slice %74 {offsets = [1, 0], sizes = [1, 16], strides = [1, 1]} : vector<2x16xf32> to vector<1x16xf32>
    %77 = arith.mulf %75, %75 : vector<1x16xf32>
    %78 = arith.subf %76, %77 : vector<1x16xf32>
    %cst_34 = arith.constant 0.000000e+00 : f32
    %79 = vector.broadcast %cst_34 : f32 to vector<1x16xf32>
    %80 = arith.maximumf %78, %79 : vector<1x16xf32>
    %c56 = arith.constant 56 : index
    %c0_35 = arith.constant 0 : index
    %81 = vector.load %arg15[%c56, %c0_35] : memref<128x128xf32, #tpu.memory_space<vmem>>, vector<2x128xf32>
    %82 = vector.extract_strided_slice %81 {offsets = [0, 0], sizes = [1, 16], strides = [1, 1]} : vector<2x128xf32> to vector<1x16xf32>
    %cst_36 = arith.constant 9.99999974E-6 : f32
    %83 = vector.broadcast %cst_36 : f32 to vector<1x16xf32>
    %84 = arith.addf %80, %83 : vector<1x16xf32>
    %85 = math.rsqrt %84 : vector<1x16xf32>
    %86 = arith.mulf %82, %85 : vector<1x16xf32>
    %87 = vector.extract_strided_slice %81 {offsets = [1, 0], sizes = [1, 16], strides = [1, 1]} : vector<2x128xf32> to vector<1x16xf32>
    %88 = arith.mulf %75, %86 : vector<1x16xf32>
    %89 = arith.subf %87, %88 : vector<1x16xf32>
    %90 = tpu.concatenate %86, %89 in 0 : vector<1x16xf32>, vector<1x16xf32> -> vector<2x16xf32>
    %c64 = arith.constant 64 : index
    %c0_37 = arith.constant 0 : index
    %91 = vector.load %arg15[%c64, %c0_37] : memref<128x128xf32, #tpu.memory_space<vmem>>, vector<16x128xf32>
    %cst_38 = arith.constant dense<0.000000e+00> : vector<2x128xf32>
    %92 = tpu.matmul %90, %91, %cst_38 {dimension_numbers = #tpu.dot_dimension_numbers<[1], [0], [0], [1], [0, 0, 1, 1], [], []>} : vector<2x16xf32>, vector<16x128xf32>, vector<2x128xf32> -> vector<2x128xf32>
    %93 = vector.extract_strided_slice %92 {offsets = [0, 0], sizes = [1, 128], strides = [1, 1]} : vector<2x128xf32> to vector<1x128xf32>
    %94 = vector.broadcast %93 : vector<1x128xf32> to vector<8x128xf32>
    %95 = arith.mulf %64, %94 : vector<8x128xf32>
    %96 = vector.extract_strided_slice %92 {offsets = [1, 0], sizes = [1, 128], strides = [1, 1]} : vector<2x128xf32> to vector<1x128xf32>
    %97 = vector.broadcast %96 : vector<1x128xf32> to vector<8x128xf32>
    %98 = arith.addf %95, %97 : vector<8x128xf32>
    %c0_39 = arith.constant 0 : index
    %c0_40 = arith.constant 0 : index
    %99 = vector.load %arg12[%c0_39, %c0_40] : memref<128x384xbf16, #tpu.memory_space<vmem>>, vector<128x384xbf16>
    %100 = arith.extf %99 : vector<128x384xbf16> to vector<128x384xf32>
    %cst_41 = arith.constant dense<0.000000e+00> : vector<8x384xf32>
    %101 = tpu.matmul %98, %100, %cst_41 {dimension_numbers = #tpu.dot_dimension_numbers<[1], [0], [0], [1], [0, 0, 1, 1], [], []>} : vector<8x128xf32>, vector<128x384xf32>, vector<8x384xf32> -> vector<8x384xf32>
    %102 = vector.extract_strided_slice %101 {offsets = [0, 0], sizes = [8, 128], strides = [1, 1]} : vector<8x384xf32> to vector<8x128xf32>
    %103 = vector.extract_strided_slice %101 {offsets = [0, 128], sizes = [8, 128], strides = [1, 1]} : vector<8x384xf32> to vector<8x128xf32>
    %104 = vector.extract_strided_slice %101 {offsets = [0, 256], sizes = [8, 128], strides = [1, 1]} : vector<8x384xf32> to vector<8x128xf32>
    %105 = tpu.concatenate %102, %103, %104 in 0 : vector<8x128xf32>, vector<8x128xf32>, vector<8x128xf32> -> vector<24x128xf32>
    %c0_42 = arith.constant 0 : index
    %c0_43 = arith.constant 0 : index
    %106 = vector.load %arg11[%c0_42, %c0_43] : memref<16x24xbf16, #tpu.memory_space<vmem>>, vector<16x24xbf16>
    %107 = arith.extf %106 : vector<16x24xbf16> to vector<16x24xf32>
    %cst_44 = arith.constant dense<0.000000e+00> : vector<16x128xf32>
    %108 = tpu.matmul %107, %105, %cst_44 {dimension_numbers = #tpu.dot_dimension_numbers<[1], [0], [0], [1], [0, 0, 1, 1], [], []>} : vector<16x24xf32>, vector<24x128xf32>, vector<16x128xf32> -> vector<16x128xf32>
    %c80 = arith.constant 80 : index
    %c0_45 = arith.constant 0 : index
    %109 = vector.load %arg15[%c80, %c0_45] : memref<128x128xf32, #tpu.memory_space<vmem>>, vector<1x128xf32>
    %110 = vector.broadcast %109 : vector<1x128xf32> to vector<16x128xf32>
    %111 = arith.addf %108, %110 : vector<16x128xf32>
    %112 = arith.addf %111, %13 : vector<16x128xf32>
    %c0_46 = arith.constant 0 : index
    %c0_47 = arith.constant 0 : index
    %113 = vector.load %arg17[%c0_46, %c0_47] : memref<16x128xf32, #tpu.memory_space<vmem>>, vector<16x128xf32>
    tpu.vector_store %arg17[%c0_46, %c0_47], %112 {strides = array<i32>} : memref<16x128xf32, #tpu.memory_space<vmem>>, vector<16x128xf32>,
    %cst_48 = arith.constant 0.000000e+00 : f32
    %114 = vector.broadcast %cst_48 : f32 to vector<16x128xf32>
    %115 = arith.maximumf %112, %114 : vector<16x128xf32>
    %cst_49 = arith.constant dense<0.000000e+00> : vector<128xf32>
    %116 = vector.multi_reduction <add>, %115, %cst_49 [0] : vector<16x128xf32> to vector<128xf32>
    %117 = vector.shape_cast %116 : vector<128xf32> to vector<1x128xf32>
    %118 = arith.mulf %115, %115 : vector<16x128xf32>
    %cst_50 = arith.constant dense<0.000000e+00> : vector<128xf32>
    %119 = vector.multi_reduction <add>, %118, %cst_50 [0] : vector<16x128xf32> to vector<128xf32>
    %120 = vector.shape_cast %119 : vector<128xf32> to vector<1x128xf32>
    %121 = tpu.concatenate %117, %120 in 0 : vector<1x128xf32>, vector<1x128xf32> -> vector<2x128xf32>
    %c0_51 = arith.constant 0 : index
    %c0_52 = arith.constant 0 : index
    %122 = vector.load %arg13[%c0_51, %c0_52] : memref<128x8xf32, #tpu.memory_space<vmem>>, vector<128x8xf32>
    %cst_53 = arith.constant dense<0.000000e+00> : vector<2x8xf32>
    %123 = tpu.matmul %121, %122, %cst_53 {dimension_numbers = #tpu.dot_dimension_numbers<[1], [0], [0], [1], [0, 0, 1, 1], [], []>} : vector<2x128xf32>, vector<128x8xf32>, vector<2x8xf32> -> vector<2x8xf32>
    %cst_54 = arith.constant 7.812500e-03 : f32
    %124 = vector.broadcast %cst_54 : f32 to vector<2x8xf32>
    %125 = arith.mulf %123, %124 : vector<2x8xf32>
    %126 = vector.extract_strided_slice %125 {offsets = [0, 0], sizes = [1, 8], strides = [1, 1]} : vector<2x8xf32> to vector<1x8xf32>
    %127 = vector.extract_strided_slice %125 {offsets = [1, 0], sizes = [1, 8], strides = [1, 1]} : vector<2x8xf32> to vector<1x8xf32>
    %128 = arith.mulf %126, %126 : vector<1x8xf32>
    %129 = arith.subf %127, %128 : vector<1x8xf32>
    %cst_55 = arith.constant 0.000000e+00 : f32
    %130 = vector.broadcast %cst_55 : f32 to vector<1x8xf32>
    %131 = arith.maximumf %129, %130 : vector<1x8xf32>
    %c88 = arith.constant 88 : index
    %c0_56 = arith.constant 0 : index
    %132 = vector.load %arg15[%c88, %c0_56] : memref<128x128xf32, #tpu.memory_space<vmem>>, vector<2x128xf32>
    %133 = vector.extract_strided_slice %132 {offsets = [0, 0], sizes = [1, 8], strides = [1, 1]} : vector<2x128xf32> to vector<1x8xf32>
    %cst_57 = arith.constant 9.99999974E-6 : f32
    %134 = vector.broadcast %cst_57 : f32 to vector<1x8xf32>
    %135 = arith.addf %131, %134 : vector<1x8xf32>
    %136 = math.rsqrt %135 : vector<1x8xf32>
    %137 = arith.mulf %133, %136 : vector<1x8xf32>
    %138 = vector.extract_strided_slice %132 {offsets = [1, 0], sizes = [1, 8], strides = [1, 1]} : vector<2x128xf32> to vector<1x8xf32>
    %139 = arith.mulf %126, %137 : vector<1x8xf32>
    %140 = arith.subf %138, %139 : vector<1x8xf32>
    %141 = tpu.concatenate %137, %140 in 0 : vector<1x8xf32>, vector<1x8xf32> -> vector<2x8xf32>
    %c96 = arith.constant 96 : index
    %c0_58 = arith.constant 0 : index
    %142 = vector.load %arg15[%c96, %c0_58] : memref<128x128xf32, #tpu.memory_space<vmem>>, vector<8x128xf32>
    %cst_59 = arith.constant dense<0.000000e+00> : vector<2x128xf32>
    %143 = tpu.matmul %141, %142, %cst_59 {dimension_numbers = #tpu.dot_dimension_numbers<[1], [0], [0], [1], [0, 0, 1, 1], [], []>} : vector<2x8xf32>, vector<8x128xf32>, vector<2x128xf32> -> vector<2x128xf32>
    %144 = vector.extract_strided_slice %143 {offsets = [0, 0], sizes = [1, 128], strides = [1, 1]} : vector<2x128xf32> to vector<1x128xf32>
    %145 = vector.broadcast %144 : vector<1x128xf32> to vector<16x128xf32>
    %146 = arith.mulf %115, %145 : vector<16x128xf32>
    %147 = vector.extract_strided_slice %143 {offsets = [1, 0], sizes = [1, 128], strides = [1, 1]} : vector<2x128xf32> to vector<1x128xf32>
    %148 = vector.broadcast %147 : vector<1x128xf32> to vector<16x128xf32>
    %149 = arith.addf %146, %148 : vector<16x128xf32>
    %c0_60 = arith.constant 0 : index
    %c0_61 = arith.constant 0 : index
    %150 = vector.load %arg6[%c0_60, %c0_61] : memref<128x384xbf16, #tpu.memory_space<vmem>>, vector<128x384xbf16>
    %151 = arith.extf %150 : vector<128x384xbf16> to vector<128x384xf32>
    %cst_62 = arith.constant dense<0.000000e+00> : vector<16x384xf32>
    %152 = tpu.matmul %149, %151, %cst_62 {dimension_numbers = #tpu.dot_dimension_numbers<[1], [0], [0], [1], [0, 0, 1, 1], [], []>} : vector<16x128xf32>, vector<128x384xf32>, vector<16x384xf32> -> vector<16x384xf32>
    %153 = vector.extract_strided_slice %152 {offsets = [0, 0], sizes = [16, 128], strides = [1, 1]} : vector<16x384xf32> to vector<16x128xf32>
    %154 = vector.extract_strided_slice %152 {offsets = [0, 128], sizes = [16, 128], strides = [1, 1]} : vector<16x384xf32> to vector<16x128xf32>
    %155 = vector.extract_strided_slice %152 {offsets = [0, 256], sizes = [16, 128], strides = [1, 1]} : vector<16x384xf32> to vector<16x128xf32>
    %156 = tpu.concatenate %153, %154, %155 in 0 : vector<16x128xf32>, vector<16x128xf32>, vector<16x128xf32> -> vector<48x128xf32>
    %c0_63 = arith.constant 0 : index
    %c0_64 = arith.constant 0 : index
    %157 = vector.load %arg5[%c0_63, %c0_64] : memref<32x48xbf16, #tpu.memory_space<vmem>>, vector<32x48xbf16>
    %158 = arith.extf %157 : vector<32x48xbf16> to vector<32x48xf32>
    %cst_65 = arith.constant dense<0.000000e+00> : vector<32x128xf32>
    %159 = tpu.matmul %158, %156, %cst_65 {dimension_numbers = #tpu.dot_dimension_numbers<[1], [0], [0], [1], [0, 0, 1, 1], [], []>} : vector<32x48xf32>, vector<48x128xf32>, vector<32x128xf32> -> vector<32x128xf32>
    %c24 = arith.constant 24 : index
    %c0_66 = arith.constant 0 : index
    %160 = vector.load %arg15[%c24, %c0_66] : memref<128x128xf32, #tpu.memory_space<vmem>>, vector<1x128xf32>
    %161 = vector.broadcast %160 : vector<1x128xf32> to vector<32x128xf32>
    %162 = arith.addf %159, %161 : vector<32x128xf32>
    %cst_67 = arith.constant 0.000000e+00 : f32
    %163 = vector.broadcast %cst_67 : f32 to vector<32x128xf32>
    %164 = arith.maximumf %162, %163 : vector<32x128xf32>
    %cst_68 = arith.constant dense<0.000000e+00> : vector<128xf32>
    %165 = vector.multi_reduction <add>, %164, %cst_68 [0] : vector<32x128xf32> to vector<128xf32>
    %166 = vector.shape_cast %165 : vector<128xf32> to vector<1x128xf32>
    %167 = arith.mulf %164, %164 : vector<32x128xf32>
    %cst_69 = arith.constant dense<0.000000e+00> : vector<128xf32>
    %168 = vector.multi_reduction <add>, %167, %cst_69 [0] : vector<32x128xf32> to vector<128xf32>
    %169 = vector.shape_cast %168 : vector<128xf32> to vector<1x128xf32>
    %170 = tpu.concatenate %166, %169 in 0 : vector<1x128xf32>, vector<1x128xf32> -> vector<2x128xf32>
    %c0_70 = arith.constant 0 : index
    %c0_71 = arith.constant 0 : index
    %171 = vector.load %arg7[%c0_70, %c0_71] : memref<128x4xf32, #tpu.memory_space<vmem>>, vector<128x4xf32>
    %cst_72 = arith.constant dense<0.000000e+00> : vector<2x4xf32>
    %172 = tpu.matmul %170, %171, %cst_72 {dimension_numbers = #tpu.dot_dimension_numbers<[1], [0], [0], [1], [0, 0, 1, 1], [], []>} : vector<2x128xf32>, vector<128x4xf32>, vector<2x4xf32> -> vector<2x4xf32>
    %cst_73 = arith.constant 0.001953125 : f32
    %173 = vector.broadcast %cst_73 : f32 to vector<2x4xf32>
    %174 = arith.mulf %172, %173 : vector<2x4xf32>
    %175 = vector.extract_strided_slice %174 {offsets = [0, 0], sizes = [1, 4], strides = [1, 1]} : vector<2x4xf32> to vector<1x4xf32>
    %176 = vector.extract_strided_slice %174 {offsets = [1, 0], sizes = [1, 4], strides = [1, 1]} : vector<2x4xf32> to vector<1x4xf32>
    %177 = arith.mulf %175, %175 : vector<1x4xf32>
    %178 = arith.subf %176, %177 : vector<1x4xf32>
    %cst_74 = arith.constant 0.000000e+00 : f32
    %179 = vector.broadcast %cst_74 : f32 to vector<1x4xf32>
    %180 = arith.maximumf %178, %179 : vector<1x4xf32>
    %c32 = arith.constant 32 : index
    %c0_75 = arith.constant 0 : index
    %181 = vector.load %arg15[%c32, %c0_75] : memref<128x128xf32, #tpu.memory_space<vmem>>, vector<2x128xf32>
    %182 = vector.extract_strided_slice %181 {offsets = [0, 0], sizes = [1, 4], strides = [1, 1]} : vector<2x128xf32> to vector<1x4xf32>
    %cst_76 = arith.constant 9.99999974E-6 : f32
    %183 = vector.broadcast %cst_76 : f32 to vector<1x4xf32>
    %184 = arith.addf %180, %183 : vector<1x4xf32>
    %185 = math.rsqrt %184 : vector<1x4xf32>
    %186 = arith.mulf %182, %185 : vector<1x4xf32>
    %187 = vector.extract_strided_slice %181 {offsets = [1, 0], sizes = [1, 4], strides = [1, 1]} : vector<2x128xf32> to vector<1x4xf32>
    %188 = arith.mulf %175, %186 : vector<1x4xf32>
    %189 = arith.subf %187, %188 : vector<1x4xf32>
    %190 = tpu.concatenate %186, %189 in 0 : vector<1x4xf32>, vector<1x4xf32> -> vector<2x4xf32>
    %c40 = arith.constant 40 : index
    %c0_77 = arith.constant 0 : index
    %191 = vector.load %arg15[%c40, %c0_77] : memref<128x128xf32, #tpu.memory_space<vmem>>, vector<4x128xf32>
    %cst_78 = arith.constant dense<0.000000e+00> : vector<2x128xf32>
    %192 = tpu.matmul %190, %191, %cst_78 {dimension_numbers = #tpu.dot_dimension_numbers<[1], [0], [0], [1], [0, 0, 1, 1], [], []>} : vector<2x4xf32>, vector<4x128xf32>, vector<2x128xf32> -> vector<2x128xf32>
    %193 = vector.extract_strided_slice %192 {offsets = [0, 0], sizes = [1, 128], strides = [1, 1]} : vector<2x128xf32> to vector<1x128xf32>
    %194 = vector.broadcast %193 : vector<1x128xf32> to vector<32x128xf32>
    %195 = arith.mulf %164, %194 : vector<32x128xf32>
    %196 = vector.extract_strided_slice %192 {offsets = [1, 0], sizes = [1, 128], strides = [1, 1]} : vector<2x128xf32> to vector<1x128xf32>
    %197 = vector.broadcast %196 : vector<1x128xf32> to vector<32x128xf32>
    %198 = arith.addf %195, %197 : vector<32x128xf32>
    %c0_79 = arith.constant 0 : index
    %c0_80 = arith.constant 0 : index
    %199 = vector.load %arg16[%c0_79, %c0_80] : memref<32x128xf32, #tpu.memory_space<vmem>>, vector<32x128xf32>
    tpu.vector_store %arg16[%c0_79, %c0_80], %198 {strides = array<i32>} : memref<32x128xf32, #tpu.memory_space<vmem>>, vector<32x128xf32>,
    %c0_81 = arith.constant 0 : index
    %c0_82 = arith.constant 0 : index
    %200 = vector.load %arg14[%c0_81, %c0_82] : memref<2x8xf32, #tpu.memory_space<vmem>>, vector<2x8xf32>
    %cst_83 = arith.constant dense<0.000000e+00> : vector<2x128xf32>
    %201 = tpu.matmul %200, %62, %cst_83 {dimension_numbers = #tpu.dot_dimension_numbers<[1], [0], [0], [1], [0, 0, 1, 1], [], []>} : vector<2x8xf32>, vector<8x128xf32>, vector<2x128xf32> -> vector<2x128xf32>
    %c0_84 = arith.constant 0 : index
    %c0_85 = arith.constant 0 : index
    %202 = vector.load %arg10[%c0_84, %c0_85] : memref<128x16xf32, #tpu.memory_space<vmem>>, vector<128x16xf32>
    %cst_86 = arith.constant dense<0.000000e+00> : vector<2x16xf32>
    %203 = tpu.matmul %201, %202, %cst_86 {dimension_numbers = #tpu.dot_dimension_numbers<[1], [0], [0], [1], [0, 0, 1, 1], [], []>} : vector<2x128xf32>, vector<128x16xf32>, vector<2x16xf32> -> vector<2x16xf32>
    %cst_87 = arith.constant 2.500000e-01 : f32
    %204 = vector.broadcast %cst_87 : f32 to vector<2x16xf32>
    %205 = arith.mulf %203, %204 : vector<2x16xf32>
    %c0_88 = arith.constant 0 : index
    %c0_89 = arith.constant 0 : index
    %206 = vector.load %arg18[%c0_88, %c0_89] : memref<2x16xf32, #tpu.memory_space<vmem>>, vector<2x16xf32>
    tpu.vector_store %arg18[%c0_88, %c0_89], %205 {strides = array<i32>} : memref<2x16xf32, #tpu.memory_space<vmem>>, vector<2x16xf32>,
    %c104 = arith.constant 104 : index
    %c0_90 = arith.constant 0 : index
    %207 = vector.load %arg15[%c104, %c0_90] : memref<128x128xf32, #tpu.memory_space<vmem>>, vector<16x128xf32>
    %cst_91 = arith.constant dense<0.000000e+00> : vector<2x128xf32>
    %208 = tpu.matmul %205, %207, %cst_91 {dimension_numbers = #tpu.dot_dimension_numbers<[1], [0], [0], [1], [0, 0, 1, 1], [], []>} : vector<2x16xf32>, vector<16x128xf32>, vector<2x128xf32> -> vector<2x128xf32>
    %c120 = arith.constant 120 : index
    %c0_92 = arith.constant 0 : index
    %209 = vector.load %arg15[%c120, %c0_92] : memref<128x128xf32, #tpu.memory_space<vmem>>, vector<1x128xf32>
    %210 = vector.broadcast %209 : vector<1x128xf32> to vector<2x128xf32>
    %211 = arith.addf %208, %210 : vector<2x128xf32>
    %c0_93 = arith.constant 0 : index
    %c0_94 = arith.constant 0 : index
    %212 = vector.load %arg19[%c0_93, %c0_94] : memref<2x128xf32, #tpu.memory_space<vmem>>, vector<2x128xf32>
    tpu.vector_store %arg19[%c0_93, %c0_94], %211 {strides = array<i32>} : memref<2x128xf32, #tpu.memory_space<vmem>>, vector<2x128xf32>,
    return
  }
  func.func @transform_0(%arg0: i32) -> (i32, i32) {
    %c0_i32 = arith.constant 0 : i32
    %c0_i32_0 = arith.constant 0 : i32
    %c0_i32_1 = arith.constant 0 : i32
    return %c0_i32, %c0_i32_0 : i32, i32
  }
  func.func @transform_1(%arg0: i32) -> (i32, i32) {
    %c0_i32 = arith.constant 0 : i32
    %c0_i32_0 = arith.constant 0 : i32
    %c0_i32_1 = arith.constant 0 : i32
    return %c0_i32, %c0_i32_0 : i32, i32
  }
  func.func @transform_2(%arg0: i32) -> (i32, i32) {
    %c0_i32 = arith.constant 0 : i32
    %c0_i32_0 = arith.constant 0 : i32
    %c0_i32_1 = arith.constant 0 : i32
    return %c0_i32, %c0_i32_0 : i32, i32
  }
  func.func @transform_3(%arg0: i32) -> (i32, i32) {
    %c0_i32 = arith.constant 0 : i32
    %c0_i32_0 = arith.constant 0 : i32
    %c0_i32_1 = arith.constant 0 : i32
    return %c0_i32, %c0_i32_0 : i32, i32
  }
  func.func @transform_4(%arg0: i32) -> (i32, i32) {
    %c0_i32 = arith.constant 0 : i32
    %c0_i32_0 = arith.constant 0 : i32
    %c0_i32_1 = arith.constant 0 : i32
    return %c0_i32, %c0_i32_0 : i32, i32
  }
  func.func @transform_5(%arg0: i32) -> (i32, i32) {
    %c0_i32 = arith.constant 0 : i32
    %c0_i32_0 = arith.constant 0 : i32
    %c0_i32_1 = arith.constant 0 : i32
    return %c0_i32, %c0_i32_0 : i32, i32
  }
  func.func @transform_6(%arg0: i32) -> (i32, i32) {
    %c0_i32 = arith.constant 0 : i32
    %c0_i32_0 = arith.constant 0 : i32
    %c0_i32_1 = arith.constant 0 : i32
    return %c0_i32, %c0_i32_0 : i32, i32
  }
  func.func @transform_7(%arg0: i32) -> (i32, i32) {
    %c0_i32 = arith.constant 0 : i32
    %c0_i32_0 = arith.constant 0 : i32
    %c0_i32_1 = arith.constant 0 : i32
    return %c0_i32, %c0_i32_0 : i32, i32
  }
  func.func @transform_8(%arg0: i32) -> (i32, i32) {
    %c0_i32 = arith.constant 0 : i32
    %c0_i32_0 = arith.constant 0 : i32
    %c0_i32_1 = arith.constant 0 : i32
    return %c0_i32, %c0_i32_0 : i32, i32
  }
  func.func @transform_9(%arg0: i32) -> (i32, i32) {
    %c0_i32 = arith.constant 0 : i32
    %c0_i32_0 = arith.constant 0 : i32
    %c0_i32_1 = arith.constant 0 : i32
    return %c0_i32, %c0_i32_0 : i32, i32
  }
  func.func @transform_10(%arg0: i32) -> (i32, i32) {
    %c0_i32 = arith.constant 0 : i32
    %c0_i32_0 = arith.constant 0 : i32
    %c0_i32_1 = arith.constant 0 : i32
    return %c0_i32, %c0_i32_0 : i32, i32
  }
  func.func @transform_11(%arg0: i32) -> (i32, i32) {
    %c0_i32 = arith.constant 0 : i32
    %c0_i32_0 = arith.constant 0 : i32
    %c0_i32_1 = arith.constant 0 : i32
    return %c0_i32, %c0_i32_0 : i32, i32
  }
  func.func @transform_12(%arg0: i32) -> (i32, i32) {
    %c0_i32 = arith.constant 0 : i32
    %c0_i32_0 = arith.constant 0 : i32
    %c0_i32_1 = arith.constant 0 : i32
    return %c0_i32, %c0_i32_0 : i32, i32
  }
  func.func @transform_13(%arg0: i32) -> (i32, i32) {
    %c0_i32 = arith.constant 0 : i32
    %c0_i32_0 = arith.constant 0 : i32
    %c0_i32_1 = arith.constant 0 : i32
    return %c0_i32, %c0_i32_0 : i32, i32
  }
  func.func @transform_14(%arg0: i32) -> (i32, i32) {
    %c0_i32 = arith.constant 0 : i32
    %c0_i32_0 = arith.constant 0 : i32
    %c0_i32_1 = arith.constant 0 : i32
    return %c0_i32, %c0_i32_0 : i32, i32
  }
  func.func @transform_15(%arg0: i32) -> (i32, i32) {
    %c0_i32 = arith.constant 0 : i32
    %c0_i32_0 = arith.constant 0 : i32
    %c0_i32_1 = arith.constant 0 : i32
    return %c0_i32, %c0_i32_0 : i32, i32
  }
  func.func @transform_16(%arg0: i32) -> (i32, i32) {
    %c0_i32 = arith.constant 0 : i32
    %c0_i32_0 = arith.constant 0 : i32
    %c0_i32_1 = arith.constant 0 : i32
    return %c0_i32, %c0_i32_0 : i32, i32
  }
  func.func @transform_17(%arg0: i32) -> (i32, i32) {
    %c0_i32 = arith.constant 0 : i32
    %c0_i32_0 = arith.constant 0 : i32
    %c0_i32_1 = arith.constant 0 : i32
    return %c0_i32, %c0_i32_0 : i32, i32
  }
  func.func @transform_18(%arg0: i32) -> (i32, i32) {
    %c0_i32 = arith.constant 0 : i32
    %c0_i32_0 = arith.constant 0 : i32
    %c0_i32_1 = arith.constant 0 : i32
    return %c0_i32, %c0_i32_0 : i32, i32
  }
}

</mosaic_0001>

<bundles_post_ra>
// kernel: tpu_custom_call.1
= control target key start
LH: loop header
LB: loop body
LE: loop exit
PB: predicated region body
PF: predicated region fallthrough
CT: control target
= control target key end

     0   :  { %s4690_s0 = inlined_call_operand.vmem [shape: f32[32,128], index: 0, kind: input, shape index: {}]   ;;  %s4691_s1 = inlined_call_operand.vmem [shape: bf16[48,32], index: 1, kind: input, shape index: {}]   ;;  %s4692_s2 = inlined_call_operand.vmem [shape: bf16[384,128], index: 2, kind: input, shape index: {}]   ;;  %s4693_s3 = inlined_call_operand.vmem [shape: f32[128,8], index: 3, kind: input, shape index: {}]   ;;  %s4694_s4 = inlined_call_operand.hbm [shape: bf16[32,48], index: 4, kind: input, shape index: {}]   ;;  %s4695_s5 = inlined_call_operand.vmem [shape: bf16[128,384], index: 5, kind: input, shape index: {}]   ;;  %s4696_s6 = inlined_call_operand.vmem [shape: f32[128,4], index: 6, kind: input, shape index: {}]   ;;  %s4697_s7 = inlined_call_operand.vmem [shape: bf16[24,16], index: 7, kind: input, shape index: {}]   ;;  %s4698_s8 = inlined_call_operand.vmem [shape: bf16[384,128], index: 8, kind: input, shape index: {}]   ;;  %s4699_s9 = inlined_call_operand.vmem [shape: f32[128,16], index: 9, kind: input, shape index: {}]   ;;  %s4700_s10 = inlined_call_operand.vmem [shape: bf16[16,24], index: 10, kind: input, shape index: {}]   ;;  %s4701_s11 = inlined_call_operand.hbm [shape: bf16[128,384], index: 11, kind: input, shape index: {}]   ;;  %s4702_s12 = inlined_call_operand.vmem [shape: f32[128,8], index: 12, kind: input, shape index: {}]   ;;  %s4703_s13 = inlined_call_operand.vmem [shape: f32[2,8], index: 13, kind: input, shape index: {}]   ;;  %s4704_s14 = inlined_call_operand.hbm [shape: f32[128,128], index: 14, kind: input, shape index: {}]   ;;  %s4705_s15 = inlined_call_operand.hbm [shape: f32[32,128], index: 15, kind: output, shape index: {0}]   ;;  %s4706_s16 = inlined_call_operand.hbm [shape: f32[16,128], index: 16, kind: output, shape index: {1}]   ;;  %s4707_s17 = inlined_call_operand.hbm [shape: f32[2,16], index: 17, kind: output, shape index: {2}]   ;;  %s4708_s18 = inlined_call_operand.hbm [shape: f32[2,128], index: 18, kind: output, shape index: {3}]  }
   0x1   :  { %4712 = sst [smem:[#allocation19_spill]] %s4690_s0 }
   0x2   :  { %4713 = sst [smem:[#allocation20_spill]] %s4691_s1 }
   0x3   :  { %4714 = sst [smem:[#allocation21_spill]] %s4692_s2 }
   0x4   :  { %24 = vsyncpa [#allocation3], 0 }
   0x5   :  { %25 = vsyncpa [#allocation6], 0 }
   0x6   :  { %26 = vsyncpa [#allocation4], 0 }
   0x7   :  { %27 = vsyncpa [#allocation10], 0 }
   0x8   :  { %28 = vsyncpa [#allocation13], 0  ;;  %s3789_s27 = smov [#allocation5]  }
   0x9   :  { %s66_s28 = sshll.u32 %s3789_s27, 4  ;;  %s67_s28 = int_to_ptr.vmem [resolvable:$true] %s66_s28 }
   0xa   :  { %s3647_s29 = scalar_lea.vmem %s67_s28, 3072  ;;  %p3652_p1 = scmp.lt.s32.totalorder %s67_s28, %s67_s28 }
   0xb   :  { %p3648_p0 = scmp.ne.s32.totalorder %s67_s28, %s3647_s29  ;;  %p3653_p2 = scmp.lt.s32.totalorder %s3647_s29, %s3647_s29 }
   0xd   :  { %p3654_p3 = por %p3653_p2, %p3652_p1 }
   0xf   :  { %p3655_p4 = pnand %p3654_p3, %p3648_p0 }
  0x11   :  { %3658 = shalt.err (!%p3655_p4)
}
  0x12   :  { %s3790_s30 = smov 192   ;;  %s3791_s0 = smov 12  }
  0x13   :  { %72 = dma.hbm_to_vmem [thread:$0]  %s4701_s11, 3072, %s67_s28, [#allocation6], %s3790_s30, %s3790_s30, %s3791_s0  }
  0x14   :  { %s3792_s20 = smov [#allocation2]  }
  0x15   :  { %s42_s21 = sshll.u32 %s3792_s20, 4  ;;  %s43_s21 = int_to_ptr.vmem [resolvable:$true] %s42_s21 }
  0x16   :  { %s3667_s22 = scalar_lea.vmem %s43_s21, 256  ;;  %p3672_p6 = scmp.lt.s32.totalorder %s43_s21, %s43_s21 }
  0x17   :  { %p3668_p5 = scmp.ne.s32.totalorder %s43_s21, %s3667_s22  ;;  %p3673_p7 = scmp.lt.s32.totalorder %s3667_s22, %s3667_s22 }
  0x19   :  { %p3674_p8 = por %p3673_p7, %p3672_p6 }
  0x1b   :  { %p3675_p9 = pnand %p3674_p8, %p3668_p5 }
  0x1d   :  { %3678 = shalt.err (!%p3675_p9)
}
  0x1e   :  { %s3793_s2 = smov 64   ;;  %s3794_s23 = smov 4  }
  0x1f   :  { %48 = dma.hbm_to_vmem [thread:$0]  %s4694_s4, 256, %s43_s21, [#allocation3], %s3793_s2, %s3793_s2, %s3794_s23  }
  0x20   :  { %s3795_s26 = smov [#allocation7]  }
  0x21   :  { %s82_s27 = sshll.u32 %s3795_s26, 4  ;;  %s83_s27 = int_to_ptr.vmem [resolvable:$true] %s82_s27 }
  0x22   :  { %s3687_s11 = scalar_lea.vmem %s83_s27, 2048  ;;  %p3692_p11 = scmp.lt.s32.totalorder %s83_s27, %s83_s27 }
  0x23   :  { %p3688_p10 = scmp.ne.s32.totalorder %s83_s27, %s3687_s11  ;;  %p3693_p12 = scmp.lt.s32.totalorder %s3687_s11, %s3687_s11 }
  0x25   :  { %p3694_p13 = por %p3693_p12, %p3692_p11 }
  0x27   :  { %p3695_p0 = pnand %p3694_p13, %p3688_p10 }
  0x29   :  { %3698 = shalt.err (!%p3695_p0)
}
  0x2a   :  { %s3796_s28 = smov 128   ;;  %s3797_s29 = smov 8  }
  0x2b   :  { %88 = dma.hbm_to_vmem [thread:$0]  %s4704_s14, 2048, %s83_s27, [#allocation6], %s3796_s28, %s3796_s28, %s3797_s29  }
  0x2c   :  { %3779 = dma.done.wait [#allocation3], 256  }
  0x2d   :  { %3780 = vsyncadd [#allocation3], 4294967040 }
  0x2e   :  { %3781 = dma.done.wait [#allocation6], 5120  }
  0x2f   :  { %3782 = vsyncadd [#allocation6], 4294962176  ;;  %s4715_s1 = sld [smem:[#allocation19_spill]]  ;;  %vm114_vm0 = vcmask 261120   ;;  %vm3799_vm1 = vmmov 0   ;;  %vm497_vm2 = vcmask 1040384  }
  0x30   :  { %s4716_s23 = sld [smem:[#allocation20_spill]]  ;;  %vm606_vm3 = vcmask 64512   ;;  %vm698_vm4 = vcmask 130048   ;;  %vm1465_vm5 = vcmask 195584   ;;  %vm2007_vm6 = vcmask 392192   ;;  %s3801_s26 = smov [#allocation8]  }
  0x31   :  { %s4717_s27 = sld [smem:[#allocation21_spill]]  ;;  %vm2243_vm7 = vcmask 1043456   ;;  %vm2239_vm8 = vcmask 31744   ;;  %vm2498_vm9 = vcmask 123904   ;;  %s2586_s11 = sshll.u32 %s3801_s26, 4  ;;  %s2587_s11 = int_to_ptr.vmem [resolvable:$true] %s2586_s11 }
  0x35   :  { %v101_v0 = vld [vmem:[%s4715_s1 + $0x18] sm:$0xff]  ;;  %v100_v1 = vld [vmem:[%s4715_s1 + $0x10] sm:$0xff]  ;;  %v99_v3 = vld [vmem:[%s4715_s1 + $0x8] sm:$0xff] }
  0x36   :  { %3210 = vmatprep.subr.mxu0 %v101_v0  ;;  %v2670_v2 = vld [vmem:[%s4716_s23] sm:$0xff]   ;;  %v2889_v7 = vld [vmem:[%s4716_s23 + $0x8] sm:$0xff]   ;;  %v2890_v20 = vld [vmem:[%s4716_s23 + $0x10] sm:$0xff]  }
  0x37   :  { %3211 = vmatpush3.msra.mxu0 %v101_v0  ;;  %v2671_v4 = vunpack.c.l.bf16 %v2670_v2  ;;  %v2905_v5 = vld [vmem:[%s4717_s27 + $0x78] sm:$0xff]   ;;  %v2904_v10 = vld [vmem:[%s4717_s27 + $0x70] sm:$0xff]   ;;  %v98_v12 = vld [vmem:[%s4715_s1] sm:$0xff]  ;;  %v2672_v16 = vunpack.c.h.bf16 %v2670_v2  ;;  %v2675_v18 = vunpack.c.l.bf16 %v2889_v7  ;;  %v2676_v26 = vunpack.c.h.bf16 %v2889_v7 }
  0x38   :  { %v2897_v6 = vld [vmem:[%s4717_s27 + $0x38] sm:$0xff]   ;;  %3212 = vmatprep.subr.mxu0 %v100_v1  ;;  %v2743_v8 = vunpack.c.l.bf16 %v2905_v5  ;;  %v2744_v9 = vunpack.c.h.bf16 %v2905_v5  ;;  %v2896_v15 = vld [vmem:[%s4717_s27 + $0x30] sm:$0xff]   ;;  %v2740_v17 = vunpack.c.h.bf16 %v2904_v10  ;;  %v2739_v22 = vunpack.c.l.bf16 %v2904_v10  ;;  %v2903_v24 = vld [vmem:[%s4717_s27 + $0x68] sm:$0xff]  }
  0x39   :  { %v2913_v11 = vld [vmem:[%s4717_s27 + $0xb8] sm:$0xff]   ;;  %3213 = vmatpush3.msra.mxu0 %v100_v1  ;;  %3218 = vmatprep.mubr.msk.f32.mxu0 %vm114_vm0, %v2671_v4  ;;  %v2711_v13 = vunpack.c.l.bf16 %v2897_v6  ;;  %v2712_v14 = vunpack.c.h.bf16 %v2897_v6  ;;  %v2708_v21 = vunpack.c.h.bf16 %v2896_v15  ;;  %v2912_v25 = vld [vmem:[%s4717_s27 + $0xb0] sm:$0xff]   ;;  %v2707_v27 = vunpack.c.l.bf16 %v2896_v15  ;;  %v2895_v28 = vld [vmem:[%s4717_s27 + $0x28] sm:$0xff]  }
  0x3a   :  { %3214 = vmatprep.subr.mxu0 %v99_v3  ;;  %2948 = vmatprep.subr.mxu1 %v2744_v9  ;;  %v2776_v19 = vunpack.c.h.bf16 %v2913_v11  ;;  %v2775_v23 = vunpack.c.l.bf16 %v2913_v11  ;;  %v2679_v29 = vunpack.c.l.bf16 %v2890_v20  ;;  %v2736_v30 = vunpack.c.h.bf16 %v2903_v24  ;;  %v2902_v33 = vld [vmem:[%s4717_s27 + $0x60] sm:$0xff]   ;;  %v2911_v36 = vld [vmem:[%s4717_s27 + $0xa8] sm:$0xff]   ;;  %v2901_v43 = vld [vmem:[%s4717_s27 + $0x58] sm:$0xff]  }
  0x3b   :  { %3215 = vmatpush3.msra.mxu0 %v99_v3  ;;  %2949 = vmatpush3.msra.mxu1 %v2712_v14  ;;  %v2772_v31 = vunpack.c.h.bf16 %v2912_v25  ;;  %v2704_v32 = vunpack.c.h.bf16 %v2895_v28  ;;  %v2680_v34 = vunpack.c.h.bf16 %v2890_v20  ;;  %v2735_v35 = vunpack.c.l.bf16 %v2903_v24  ;;  %v2894_v37 = vld [vmem:[%s4717_s27 + $0x20] sm:$0xff]   ;;  %v2893_v46 = vld [vmem:[%s4717_s27 + $0x18] sm:$0xff]   ;;  %v2900_v52 = vld [vmem:[%s4717_s27 + $0x50] sm:$0xff]  }
  0x3c   :  { %3216 = vmatprep.subr.mxu0 %v98_v12  ;;  %2950 = vmatprep.subr.mxu1 %v2743_v8  ;;  %v2771_v38 = vunpack.c.l.bf16 %v2912_v25  ;;  %v2703_v39 = vunpack.c.l.bf16 %v2895_v28  ;;  %v2732_v40 = vunpack.c.h.bf16 %v2902_v33  ;;  %v2768_v41 = vunpack.c.h.bf16 %v2911_v36  ;;  %v2910_v45 = vld [vmem:[%s4717_s27 + $0xa0] sm:$0xff]   ;;  %v2909_v54 = vld [vmem:[%s4717_s27 + $0x98] sm:$0xff]   ;;  %v2892_v55 = vld [vmem:[%s4717_s27 + $0x10] sm:$0xff]  }
  0x3d   :  { %3217 = vmatpush3.msra.mxu0 %v98_v12  ;;  %2951 = vmatpush3.msra.mxu1 %v2711_v13  ;;  %v2700_v42 = vunpack.c.h.bf16 %v2894_v37  ;;  %v2731_v44 = vunpack.c.l.bf16 %v2902_v33  ;;  %v2767_v47 = vunpack.c.l.bf16 %v2911_v36  ;;  %v2699_v48 = vunpack.c.l.bf16 %v2894_v37  ;;  %v2899_v0 = vld [vmem:[%s4717_s27 + $0x48] sm:$0xff]   ;;  %v2908_v1 = vld [vmem:[%s4717_s27 + $0x90] sm:$0xff]   ;;  %v2898_v9 = vld [vmem:[%s4717_s27 + $0x40] sm:$0xff]  }
  0x3e   :  { %3219 = vmatmul.mubr.msk.f32.vlgmr.msra.gmra.mxu0 %vm114_vm0, %v2672_v16  ;;  %2952 = vmatprep.subr.mxu1 %v2740_v17  ;;  %v2728_v49 = vunpack.c.h.bf16 %v2901_v43  ;;  %v2764_v50 = vunpack.c.h.bf16 %v2910_v45  ;;  %v2696_v51 = vunpack.c.h.bf16 %v2893_v46  ;;  %v2727_v53 = vunpack.c.l.bf16 %v2901_v43  ;;  %v2891_v4 = vld [vmem:[%s4717_s27 + $0x8] sm:$0xff]   ;;  %v2682_v13 = vld [vmem:[%s4717_s27] sm:$0xff]   ;;  %v514_v28 = vld [vmem:[%s4693_s3 + $0x78] sm:$0xff] }
  0x3f   :  { %3221 = vmatprep.mubr.msk.f32.mxu0 %vm114_vm0, %v2675_v18  ;;  %3227 = vmatprep.subr.mxu0 %v2776_v19  ;;  %v2763_v56 = vunpack.c.l.bf16 %v2910_v45  ;;  %v2695_v57 = vunpack.c.l.bf16 %v2893_v46  ;;  %v2724_v58 = vunpack.c.h.bf16 %v2900_v52  ;;  %v2760_v59 = vunpack.c.h.bf16 %v2909_v54  ;;  %v2907_v10 = vld [vmem:[%s4717_s27 + $0x88] sm:$0xff]   ;;  %v2906_v18 = vld [vmem:[%s4717_s27 + $0x80] sm:$0xff]   ;;  %v509_v33 = vld [vmem:[%s4693_s3 + $0x50] sm:$0xff] }
  0x40   :  { %2953 = vmatpush3.msra.mxu1 %v2708_v21  ;;  %3228 = vmatpush3.msra.mxu0 %v2776_v19  ;;  %v2692_v60 = vunpack.c.h.bf16 %v2892_v55  ;;  %v2723_v61 = vunpack.c.l.bf16 %v2900_v52  ;;  %v2759_v62 = vunpack.c.l.bf16 %v2909_v54  ;;  %v2691_v63 = vunpack.c.l.bf16 %v2892_v55  ;;  %v506_v36 = vld [vmem:[%s4693_s3 + $0x38] sm:$0xff]  ;;  %v505_v37 = vld [vmem:[%s4693_s3 + $0x30] sm:$0xff]  ;;  %v499_v43 = vld [vmem:[%s4693_s3] sm:$0xff] }
  0x41   :  { %2954 = vmatprep.subr.mxu1 %v2739_v22  ;;  %3229 = vmatprep.subr.mxu0 %v2775_v23  ;;  %v2720_v2 = vunpack.c.h.bf16 %v2899_v0  ;;  %v2756_v3 = vunpack.c.h.bf16 %v2908_v1  ;;  %v2688_v5 = vunpack.c.h.bf16 %v2891_v4  ;;  %v2719_v6 = vunpack.c.l.bf16 %v2899_v0  ;;  %v2648_v46 = vld [vmem:[#allocation7] ss:$0 sm:$0xff] }
  0x42   :  { %3222 = vmatmul.mubr.msk.f32.gmra.mxu0 %vm114_vm0, %v2676_v26  ;;  %2955 = vmatpush3.msra.mxu1 %v2707_v27  ;;  %v2755_v7 = vunpack.c.l.bf16 %v2908_v1  ;;  %v2687_v8 = vunpack.c.l.bf16 %v2891_v4  ;;  %v2716_v11 = vunpack.c.h.bf16 %v2898_v9  ;;  %v2752_v12 = vunpack.c.h.bf16 %v2907_v10 }
  0x43   :  { %3224 = vmatprep.mubr.msk.f32.mxu0 %vm114_vm0, %v2679_v29  ;;  %3230 = vmatpush3.msra.mxu0 %v2775_v23  ;;  %v2684_v14 = vunpack.c.h.bf16 %v2682_v13  ;;  %v2715_v15 = vunpack.c.l.bf16 %v2898_v9  ;;  %v2751_v16 = vunpack.c.l.bf16 %v2907_v10  ;;  %v2683_v17 = vunpack.c.l.bf16 %v2682_v13  ;;  %v513_v29 = vld [vmem:[%s4693_s3 + $0x70] sm:$0xff] }
  0x44   :  { %2956 = vmatprep.subr.mxu1 %v2736_v30  ;;  %3231 = vmatprep.subr.mxu0 %v2772_v31  ;;  %v2748_v19 = vunpack.c.h.bf16 %v2906_v18  ;;  %v2747_v20 = vunpack.c.l.bf16 %v2906_v18  ;;  %v3798_v27 = vmov 0.0   ;;  %v512_v30 = vld [vmem:[%s4693_s3 + $0x68] sm:$0xff] }
  0x45   :  { %2957 = vmatpush3.msra.mxu1 %v2704_v32  ;;  %3232 = vmatpush3.msra.mxu0 %v2772_v31  ;;  %v511_v31 = vld [vmem:[%s4693_s3 + $0x60] sm:$0xff]  ;;  %v510_v32 = vld [vmem:[%s4693_s3 + $0x58] sm:$0xff] }
  0x46   :  { %3225 = vmatmul.mubr.msk.f32.gmra.mxu0 %vm114_vm0, %v2680_v34  ;;  %2958 = vmatprep.subr.mxu1 %v2735_v35  ;;  %v508_v34 = vld [vmem:[%s4693_s3 + $0x48] sm:$0xff]  ;;  %v507_v35 = vld [vmem:[%s4693_s3 + $0x40] sm:$0xff] }
  0x47   :  { %3233 = vmatprep.subr.mxu0 %v2771_v38  ;;  %2959 = vmatpush3.msra.mxu1 %v2703_v39  ;;  %v503_v39 = vld [vmem:[%s4693_s3 + $0x20] sm:$0xff] }
  0x48   :  { %3234 = vmatpush3.msra.mxu0 %v2771_v38  ;;  %2960 = vmatprep.subr.mxu1 %v2732_v40  ;;  %v504_v38 = vld [vmem:[%s4693_s3 + $0x28] sm:$0xff]  ;;  %v502_v40 = vld [vmem:[%s4693_s3 + $0x18] sm:$0xff] }
  0x49   :  { %3235 = vmatprep.subr.mxu0 %v2768_v41  ;;  %2961 = vmatpush3.msra.mxu1 %v2700_v42  ;;  %v500_v42 = vld [vmem:[%s4693_s3 + $0x8] sm:$0xff] }
  0x4a   :  { %3236 = vmatpush3.msra.mxu0 %v2768_v41  ;;  %2962 = vmatprep.subr.mxu1 %v2731_v44  ;;  %v501_v41 = vld [vmem:[%s4693_s3 + $0x10] sm:$0xff] }
  0x4b   :  { %3237 = vmatprep.subr.mxu0 %v2767_v47  ;;  %2963 = vmatpush3.msra.mxu1 %v2699_v48 }
  0x4c   :  { %3238 = vmatpush3.msra.mxu0 %v2767_v47  ;;  %2964 = vmatprep.subr.mxu1 %v2728_v49 }
  0x4d   :  { %3239 = vmatprep.subr.mxu0 %v2764_v50  ;;  %2965 = vmatpush3.msra.mxu1 %v2696_v51 }
  0x4e   :  { %3240 = vmatpush3.msra.mxu0 %v2764_v50  ;;  %2966 = vmatprep.subr.mxu1 %v2727_v53 }
  0x4f   :  { %3241 = vmatprep.subr.mxu0 %v2763_v56  ;;  %2967 = vmatpush3.msra.mxu1 %v2695_v57 }
  0x50   :  { %3242 = vmatpush3.msra.mxu0 %v2763_v56  ;;  %2968 = vmatprep.subr.mxu1 %v2724_v58 }
  0x51   :  { %3243 = vmatprep.subr.mxu0 %v2760_v59  ;;  %2969 = vmatpush3.msra.mxu1 %v2692_v60 }
  0x52   :  { %3244 = vmatpush3.msra.mxu0 %v2760_v59  ;;  %2970 = vmatprep.subr.mxu1 %v2723_v61 }
  0x53   :  { %3245 = vmatprep.subr.mxu0 %v2759_v62  ;;  %2971 = vmatpush3.msra.mxu1 %v2691_v63 }
  0x54   :  { %3246 = vmatpush3.msra.mxu0 %v2759_v62  ;;  %2972 = vmatprep.subr.mxu1 %v2720_v2 }
  0x55   :  { %3247 = vmatprep.subr.mxu0 %v2756_v3  ;;  %2973 = vmatpush3.msra.mxu1 %v2688_v5 }
  0x56   :  { %3248 = vmatpush3.msra.mxu0 %v2756_v3  ;;  %2974 = vmatprep.subr.mxu1 %v2719_v6 }
  0x57   :  { %3249 = vmatprep.subr.mxu0 %v2755_v7  ;;  %2975 = vmatpush3.msra.mxu1 %v2687_v8 }
  0x58   :  { %3250 = vmatpush3.msra.mxu0 %v2755_v7  ;;  %2976 = vmatprep.subr.mxu1 %v2716_v11 }
  0x59   :  { %3251 = vmatprep.subr.mxu0 %v2752_v12  ;;  %2977 = vmatpush3.msra.mxu1 %v2684_v14 }
  0x5a   :  { %3252 = vmatpush3.msra.mxu0 %v2752_v12  ;;  %2978 = vmatprep.subr.mxu1 %v2715_v15  ;;  %v605_v12 = vld [vmem:[#allocation7 + $0x10] sm:$0xff] }
  0x5b   :  { %3253 = vmatprep.subr.mxu0 %v2751_v16  ;;  %2979 = vmatpush3.msra.mxu1 %v2683_v17 }
  0x5c   :  { %3254 = vmatpush3.msra.mxu0 %v2751_v16  ;;  %3262 = vmatprep.subr.mxu1 %v3798_v27 }
  0x5d   :  { %3255 = vmatprep.subr.mxu0 %v2748_v19 }
  0x5e   :  { %3256 = vmatpush3.msra.mxu0 %v2748_v19 }
  0x5f   :  { %3257 = vmatprep.subr.mxu0 %v2747_v20 }
  0x60   :  { %3258 = vmatpush3.msra.mxu0 %v2747_v20 }
  0x61   :  { %3297 = vmatprep.subr.mxu0 %v3798_v27 }
  0xfe   :  { %v3220_v21 = vpop.f32.mrf.mxu0 }
 0x100   :  { %v199_v22 = vpop.f32.mrf.mxu0 }
 0x102   :  { %v3223_v23 = vpop.f32.mrf.mxu0 }
 0x104   :  { %v209_v24 = vpop.f32.mrf.mxu0 }
 0x105   :  { %393 = vmatprep.mubr.f32.mxu1 %v209_v24 }
 0x106   :  { %v3226_v25 = vpop.f32.mrf.mxu0  ;;  %394 = vmatmul.mubr.f32.vlgmr.msra.gmra.mxu1 %v199_v22  ;;  %v592_v22 = vld [vmem:[#allocation7 + $0x8] sm:$0x3] }
 0x107   :  { %398 = vmatprep.mubr.f32.mxu1 %v3223_v23  ;;  %3263 = vmatpush3.msra.mxu1 %v514_v28 }
 0x108   :  { %v219_v26 = vpop.f32.mrf.mxu0  ;;  %3264 = vmatprep.subr.mxu1 %v3798_v27 }
 0x109   :  { %3259 = vmatprep.mubr.f32.mxu0 %v219_v26  ;;  %3265 = vmatpush3.msra.mxu1 %v513_v29 }
 0x10a   :  { %399 = vmatmul.mubr.f32.gmra.mxu1 %v3220_v21  ;;  %3260 = vmatmul.mubr.f32.vlgmr.msra.gmra.mxu0 %v3226_v25 }
 0x10b   :  { %3266 = vmatprep.subr.mxu1 %v3798_v27  ;;  %3294 = vmatprep.mubr.msk.f32.mxu1 %vm3799_vm1, %v3798_v27 }
 0x10c   :  { %3267 = vmatpush3.msra.mxu1 %v512_v30  ;;  %3299 = vmatprep.mubr.msk.f32.mxu0 %vm3799_vm1, %v3798_v27  ;;  %v2936_v30 = vld [vmem:[%s4698_s8 + $0xb8] sm:$0xff]  }
 0x10d   :  { %3268 = vmatprep.subr.mxu1 %v3798_v27  ;;  %3298 = vmatpush3.msra.mxu0 %v605_v12 }
 0x10e   :  { %3269 = vmatpush3.msra.mxu1 %v511_v31  ;;  %3302 = vmatprep.subr.mxu0 %v3798_v27  ;;  %v2876_v31 = vunpack.c.h.bf16 %v2936_v30 }
 0x10f   :  { %3270 = vmatprep.subr.mxu1 %v3798_v27 }
 0x110   :  { %3271 = vmatpush3.msra.mxu1 %v510_v32  ;;  %v2935_v32 = vld [vmem:[%s4698_s8 + $0xb0] sm:$0xff]  }
 0x111   :  { %3272 = vmatprep.subr.mxu1 %v3798_v27 }
 0x112   :  { %3273 = vmatpush3.msra.mxu1 %v509_v33  ;;  %v2875_v33 = vunpack.c.l.bf16 %v2936_v30 }
 0x113   :  { %3274 = vmatprep.subr.mxu1 %v3798_v27 }
 0x114   :  { %3275 = vmatpush3.msra.mxu1 %v508_v34  ;;  %v2872_v34 = vunpack.c.h.bf16 %v2935_v32 }
 0x115   :  { %3276 = vmatprep.subr.mxu1 %v3798_v27 }
 0x116   :  { %3277 = vmatpush3.msra.mxu1 %v507_v35  ;;  %v2871_v35 = vunpack.c.l.bf16 %v2935_v32 }
 0x117   :  { %3278 = vmatprep.subr.mxu1 %v3798_v27 }
 0x118   :  { %3279 = vmatpush3.msra.mxu1 %v506_v36  ;;  %v2934_v36 = vld [vmem:[%s4698_s8 + $0xa8] sm:$0xff]  }
 0x119   :  { %3280 = vmatprep.subr.mxu1 %v3798_v27 }
 0x11a   :  { %3281 = vmatpush3.msra.mxu1 %v505_v37  ;;  %v2868_v37 = vunpack.c.h.bf16 %v2934_v36 }
 0x11b   :  { %3282 = vmatprep.subr.mxu1 %v3798_v27 }
 0x11c   :  { %3283 = vmatpush3.msra.mxu1 %v504_v38  ;;  %v2867_v38 = vunpack.c.l.bf16 %v2934_v36 }
 0x11d   :  { %3284 = vmatprep.subr.mxu1 %v3798_v27 }
 0x11e   :  { %3285 = vmatpush3.msra.mxu1 %v503_v39  ;;  %v2933_v39 = vld [vmem:[%s4698_s8 + $0xa0] sm:$0xff]  }
 0x11f   :  { %3286 = vmatprep.subr.mxu1 %v3798_v27 }
 0x120   :  { %3287 = vmatpush3.msra.mxu1 %v502_v40  ;;  %v2864_v40 = vunpack.c.h.bf16 %v2933_v39 }
 0x121   :  { %3288 = vmatprep.subr.mxu1 %v3798_v27 }
 0x122   :  { %3289 = vmatpush3.msra.mxu1 %v501_v41  ;;  %v2863_v41 = vunpack.c.l.bf16 %v2933_v39 }
 0x123   :  { %3290 = vmatprep.subr.mxu1 %v3798_v27 }
 0x124   :  { %3291 = vmatpush3.msra.mxu1 %v500_v42  ;;  %v2932_v42 = vld [vmem:[%s4698_s8 + $0x98] sm:$0xff]  }
 0x125   :  { %3292 = vmatprep.subr.mxu1 %v3798_v27 }
 0x126   :  { %3293 = vmatpush3.msra.mxu1 %v499_v43  ;;  %v2860_v43 = vunpack.c.h.bf16 %v2932_v42 }
 0x127   :  { %3315 = vmatprep.subr.mxu1 %v3798_v27 }
 0x1c6   :  { %v2980_v44 = vpop.f32.mrf.mxu1 }
 0x1c8   :  { %v2981_v45 = vpop.f32.mrf.mxu1 }
 0x1c9   :  { %v2982_v47 = vadd.f32 %v2981_v45, %v2980_v44  ;;  %v2859_v44 = vunpack.c.l.bf16 %v2932_v42  ;;  %v680_v45 = vlaneseq }
 0x1ca   :  { %v2983_v48 = vpop.f32.mrf.mxu1  ;;  %v3261_v49 = vpop.f32.mrf.mxu0 }
 0x1cb   :  { %v396_v50 = vadd.f32 %v2982_v47, %v2648_v46 }
 0x1cc   :  { %v2984_v51 = vpop.f32.mrf.mxu1  ;;  %v470_v52 = vpop.f32.mrf.mxu0 }
 0x1cd   :  { %v2985_v53 = vadd.f32 %v2984_v51, %v2983_v48  ;;  %v4080_v54 = vadd.f32 %v470_v52, %v396_v50 }
 0x1cf   :  { %v401_v55 = vadd.f32 %v2985_v53, %v2648_v46  ;;  %v4085_v57 = vmax.f32 %v4080_v54, 0.0  ;;  %v681_v46 = vshrl.u32 %v680_v45, 7  ;;  %v2921_v45 = vld [vmem:[%s4698_s8 + $0x40] sm:$0xff]  }
 0x1d1   :  { %v4082_v56 = vadd.f32 %v3261_v49, %v401_v55  ;;  %v488_v60 = vmul.f32 %v4085_v57, %v4085_v57  ;;  %v4129_v47 = vsub.s32 0, %v681_v46  ;;  %v4131_v48 = vsub.s32 1, %v681_v46 }
 0x1d3   :  { %v4088_v58 = vmax.f32 %v4082_v56, 0.0 }
 0x1d5   :  { %v481_v59 = vadd.f32 %v4088_v58, %v4085_v57  ;;  %v489_v61 = vmul.f32 %v4088_v58, %v4088_v58 }
 0x1d7   :  { %v482_v62 = vrot.slane %v481_v59, 4  ;;  %v490_v63 = vadd.f32 %v489_v61, %v488_v60  ;;  %v2928_v60 = vld [vmem:[%s4698_s8 + $0x78] sm:$0xff]  }
 0x1d8   :  { %v2920_v61 = vld [vmem:[%s4698_s8 + $0x38] sm:$0xff]  }
 0x1d9   :  { %v483_v0 = vadd.f32 %v482_v62, %v481_v59  ;;  %v491_v1 = vrot.slane %v490_v63, 4  ;;  %v2778_v59 = vld [vmem:[%s4697_s7] sm:$0xff]  }
 0x1db   :  { %v484_v2 = vrot.slane %v483_v0, 2  ;;  %v492_v3 = vadd.f32 %v491_v1, %v490_v63  ;;  %v2779_v63 = vunpack.c.l.bf16 %v2778_v59  ;;  %v2927_v1 = vld [vmem:[%s4698_s8 + $0x70] sm:$0xff]  }
 0x1dd   :  { %v485_v4 = vadd.f32 %v484_v2, %v483_v0  ;;  %v493_v5 = vrot.slane %v492_v3, 2  ;;  %v2844_v0 = vunpack.c.h.bf16 %v2928_v60  ;;  %v2843_v2 = vunpack.c.l.bf16 %v2928_v60 }
 0x1df   :  { %v486_v6 = vrot.slane %v485_v4, 1  ;;  %v494_v7 = vadd.f32 %v493_v5, %v492_v3  ;;  %v2919_v3 = vld [vmem:[%s4698_s8 + $0x30] sm:$0xff]   ;;  %v2780_v5 = vunpack.c.h.bf16 %v2778_v59 }
 0x1e0   :  { %v2807_v12 = vunpack.c.l.bf16 %v2919_v3 }
 0x1e1   :  { %v495_v8 = vrot.slane %v494_v7, 1  ;;  %v487_v9 = vadd.f32 %v486_v6, %v485_v4  ;;  %v2811_v4 = vunpack.c.l.bf16 %v2920_v61  ;;  %v2840_v6 = vunpack.c.h.bf16 %v2927_v1 }
 0x1e3   :  { %v496_v10 = vadd.f32 %v495_v8, %v494_v7  ;;  %v694_v7 = vld [vmem:[%s4697_s7 + $0x8] sm:$0xf]  ;;  %v2808_v8 = vunpack.c.h.bf16 %v2919_v3  ;;  %v1058_v3 = vld [vmem:[%s4699_s9 + $0x70] sm:$0xff] }
 0x1e5   :  { %v498_v11 = vsel %vm497_vm2, %v487_v9, %v496_v10  ;;  %v2926_v9 = vld [vmem:[%s4698_s8 + $0x68] sm:$0xff]   ;;  %v2839_v10 = vunpack.c.l.bf16 %v2927_v1  ;;  %v1059_v1 = vld [vmem:[%s4699_s9 + $0x78] sm:$0xff] }
 0x1e6   :  { %3295 = vmatmul.mubr.f32.vlgmr.msra.gmra.mxu1 %v498_v11  ;;  %v2918_v11 = vld [vmem:[%s4698_s8 + $0x28] sm:$0xff]  }
 0x1e7   :  { %3347 = vmatprep.mubr.msk.f32.mxu1 %vm3799_vm1, %v3798_v27  ;;  %3316 = vmatpush3.msra.mxu1 %v2876_v31  ;;  %v2915_v31 = vld [vmem:[%s4698_s8 + $0x10] sm:$0xff]  }
 0x1e8   :  { %3317 = vmatprep.subr.mxu1 %v3798_v27 }
 0x1e9   :  { %3318 = vmatpush3.msra.mxu1 %v2875_v33 }
 0x1ea   :  { %3319 = vmatprep.subr.mxu1 %v3798_v27 }
 0x1eb   :  { %3320 = vmatpush3.msra.mxu1 %v2872_v34  ;;  %v2792_v34 = vunpack.c.h.bf16 %v2915_v31 }
 0x1ec   :  { %3321 = vmatprep.subr.mxu1 %v3798_v27 }
 0x1ed   :  { %3322 = vmatpush3.msra.mxu1 %v2871_v35  ;;  %v2922_v35 = vld [vmem:[%s4698_s8 + $0x48] sm:$0xff]  }
 0x1ee   :  { %3323 = vmatprep.subr.mxu1 %v3798_v27  ;;  %v2820_v39 = vunpack.c.h.bf16 %v2922_v35 }
 0x1ef   :  { %3324 = vmatpush3.msra.mxu1 %v2868_v37  ;;  %v2914_v37 = vld [vmem:[%s4698_s8 + $0x8] sm:$0xff]  }
 0x1f0   :  { %3325 = vmatprep.subr.mxu1 %v3798_v27 }
 0x1f1   :  { %3326 = vmatpush3.msra.mxu1 %v2867_v38  ;;  %v2791_v38 = vunpack.c.l.bf16 %v2915_v31 }
 0x1f2   :  { %3327 = vmatprep.subr.mxu1 %v3798_v27 }
 0x1f3   :  { %3328 = vmatpush3.msra.mxu1 %v2864_v40  ;;  %v2788_v40 = vunpack.c.h.bf16 %v2914_v37 }
 0x1f4   :  { %3329 = vmatprep.subr.mxu1 %v3798_v27 }
 0x1f5   :  { %3330 = vmatpush3.msra.mxu1 %v2863_v41  ;;  %v2931_v41 = vld [vmem:[%s4698_s8 + $0x90] sm:$0xff]  }
 0x1f6   :  { %3331 = vmatprep.subr.mxu1 %v3798_v27  ;;  %v2856_v42 = vunpack.c.h.bf16 %v2931_v41  ;;  %v2855_v46 = vunpack.c.l.bf16 %v2931_v41 }
 0x1f7   :  { %3332 = vmatpush3.msra.mxu1 %v2860_v43  ;;  %v2819_v43 = vunpack.c.l.bf16 %v2922_v35 }
 0x1f8   :  { %3333 = vmatprep.subr.mxu1 %v3798_v27 }
 0x1f9   :  { %3334 = vmatpush3.msra.mxu1 %v2859_v44  ;;  %v2787_v44 = vunpack.c.l.bf16 %v2914_v37 }
 0x1fa   :  { %3335 = vmatprep.subr.mxu1 %v3798_v27 }
 0x1fb   :  { %3336 = vmatpush3.msra.mxu1 %v2856_v42 }
 0x1fc   :  { %3337 = vmatprep.subr.mxu1 %v3798_v27 }
 0x1fd   :  { %3338 = vmatpush3.msra.mxu1 %v2855_v46  ;;  %v4296_v46 = vld [vmem:[#allocation5 + $0xb4] sm:$0xff] }
 0x1fe   :  { %3339 = vmatprep.subr.mxu1 %v3798_v27 }
 0x2a6   :  { %v581_v13 = vpop.f32.mrf.mxu1 }
 0x2a7   :  { %v585_v14 = vmul.f32 0.0078125, %v581_v13  ;;  %v697_v13 = vunpack.c.l.bf16 %v694_v7  ;;  %v1056_v7 = vld [vmem:[%s4699_s9 + $0x60] sm:$0xff] }
 0x2a8   :  { %v3296_v15 = vpop.f32.mrf.mxu1 }
 0x2a9   :  { %v586_v16 = vmul.f32 %v585_v14, %v585_v14  ;;  %v2804_v15 = vunpack.c.h.bf16 %v2918_v11 }
 0x2ab   :  { %v588_v17 = vrot.slane %v586_v16, 7  ;;  %v2925_v16 = vld [vmem:[%s4698_s8 + $0x60] sm:$0xff]  }
 0x2ad   :  { %v590_v18 = vsub.f32 %v585_v14, %v588_v17  ;;  %v2835_v17 = vunpack.c.l.bf16 %v2926_v9 }
 0x2af   :  { %v591_v19 = vmax.f32 %v590_v18, 0.0  ;;  %v2917_v18 = vld [vmem:[%s4698_s8 + $0x20] sm:$0xff]  }
 0x2b1   :  { %v593_v20 = vadd.f32 1e-05, %v591_v19  ;;  %v2803_v19 = vunpack.c.l.bf16 %v2918_v11  ;;  %v1052_v11 = vld [vmem:[%s4699_s9 + $0x40] sm:$0xff] }
 0x2b3   :  { %3631 = vrsqrt.f32 %v593_v20  ;;  %v2832_v20 = vunpack.c.h.bf16 %v2925_v16 }
 0x2c0   :  { %v3632_v21 = vpop.eup %3631 }
 0x2c1   :  { %v596_v23 = vrot.slane %v3632_v21, 1  ;;  %v2800_v21 = vunpack.c.h.bf16 %v2917_v18 }
 0x2c3   :  { %v598_v24 = vmul.f32 %v596_v23, %v592_v22  ;;  %v2831_v23 = vunpack.c.l.bf16 %v2925_v16  ;;  %v1047_v16 = vld [vmem:[%s4699_s9 + $0x18] sm:$0xff] }
 0x2c5   :  { %v599_v25 = vmul.f32 %v598_v24, %v585_v14  ;;  %v2836_v14 = vunpack.c.h.bf16 %v2926_v9  ;;  %v1054_v9 = vld [vmem:[%s4699_s9 + $0x50] sm:$0xff] }
 0x2c7   :  { %v601_v26 = vrot.slane %v599_v25, 7  ;;  %v2799_v25 = vunpack.c.l.bf16 %v2917_v18  ;;  %v1045_v18 = vld [vmem:[%s4699_s9 + $0x8] sm:$0xff] }
 0x2c9   :  { %v603_v28 = vsub.f32 %v592_v22, %v601_v26  ;;  %v2924_v22 = vld [vmem:[%s4698_s8 + $0x58] sm:$0xff]  }
 0x2ca   :  { %v2828_v26 = vunpack.c.h.bf16 %v2924_v22  ;;  %v2827_v30 = vunpack.c.l.bf16 %v2924_v22  ;;  %v2653_v22 = vld [vmem:[#allocation7 + $0x30] ss:$0 sm:$0xff] }
 0x2cb   :  { %v604_v29 = vsel %vm497_vm2, %v598_v24, %v603_v28  ;;  %v2916_v24 = vld [vmem:[%s4698_s8 + $0x18] sm:$0xff]  }
 0x2cc   :  { %3300 = vmatmul.mubr.msk.f32.vlgmr.msra.gmra.mxu0 %vm606_vm3, %v604_v29  ;;  %v2796_v28 = vunpack.c.h.bf16 %v2916_v24  ;;  %v2923_v29 = vld [vmem:[%s4698_s8 + $0x50] sm:$0xff]   ;;  %v2795_v32 = vunpack.c.l.bf16 %v2916_v24 }
 0x2cd   :  { %3306 = vmatprep.mubr.msk.f32.mxu0 %vm3799_vm1, %v3798_v27  ;;  %v2824_v33 = vunpack.c.h.bf16 %v2923_v29  ;;  %v2823_v36 = vunpack.c.l.bf16 %v2923_v29 }
 0x38c   :  { %v676_v49 = vpop.f32.mrf.mxu0 }
 0x38d   :  { %v683_v50 = vrot.slane %v676_v49, %v4129_v47  ;;  %v689_v55 = vrot.slane %v676_v49, %v4131_v48  ;;  %v2816_v49 = vunpack.c.h.bf16 %v2921_v45 }
 0x38e   :  { %v3301_v51 = vpop.f32.mrf.mxu0 }
 0x38f   :  { %v684_v52 = vmul.f32 %v683_v50, %v4085_v57  ;;  %v685_v53 = vmul.f32 %v683_v50, %v4088_v58  ;;  %v2812_v58 = vunpack.c.h.bf16 %v2920_v61  ;;  %v2782_v50 = vld [vmem:[%s4698_s8] sm:$0xff]   ;;  %v2930_v51 = vld [vmem:[%s4698_s8 + $0x88] sm:$0xff]  }
 0x390   :  { %v2783_v59 = vunpack.c.l.bf16 %v2782_v50  ;;  %v2851_v60 = vunpack.c.l.bf16 %v2930_v51  ;;  %v2929_v61 = vld [vmem:[%s4698_s8 + $0x80] sm:$0xff]  }
 0x391   :  { %v691_v62 = vadd.f32 %v689_v55, %v685_v53  ;;  %v690_v57 = vadd.f32 %v689_v55, %v684_v52  ;;  %v2784_v52 = vunpack.c.h.bf16 %v2782_v50  ;;  %v2852_v53 = vunpack.c.h.bf16 %v2930_v51  ;;  %v1266_v50 = vld [vmem:[#allocation5 + $0xb0] ss:$12 sps:$4 sm:$0xff]  }
 0x392   :  { %v2815_v55 = vunpack.c.l.bf16 %v2921_v45  ;;  %v1150_v45 = vld [vmem:[#allocation7 + $0x40] sm:$0xff]  ;;  %v1314_v51 = vunpack.c.h.bf16 %v1266_v50 }
 0x393   :  { %3303 = vmatpush3.msra.mxu0 %v691_v62  ;;  %3340 = vmatpush3.msra.mxu1 %v2852_v53  ;;  %v2848_v62 = vunpack.c.h.bf16 %v2929_v61  ;;  %v1262_v53 = vld [vmem:[#allocation5 + $0x98] ss:$12 sps:$4 sm:$0xff]  }
 0x394   :  { %3304 = vmatprep.subr.mxu0 %v3798_v27  ;;  %3341 = vmatprep.subr.mxu1 %v3798_v27 }
 0x395   :  { %3305 = vmatpush3.msra.mxu0 %v690_v57  ;;  %3342 = vmatpush3.msra.mxu1 %v2851_v60  ;;  %v1258_v60 = vld [vmem:[#allocation5 + $0x80] ss:$12 sps:$4 sm:$0xff]  }
 0x396   :  { %3307 = vmatmul.mubr.msk.f32.vlgmr.msra.gmra.mxu0 %vm698_vm4, %v2779_v63  ;;  %3028 = vmatprep.subr.mxu0 %v2844_v0  ;;  %v2847_v63 = vunpack.c.l.bf16 %v2929_v61  ;;  %v1302_v61 = vunpack.c.h.bf16 %v1258_v60 }
 0x397   :  { %3309 = vmatprep.mubr.msk.f32.mxu0 %vm3799_vm1, %v3798_v27  ;;  %3029 = vmatpush3.msra.mxu0 %v2812_v58 }
 0x398   :  { %3030 = vmatprep.subr.mxu0 %v2843_v2  ;;  %3343 = vmatprep.subr.mxu1 %v3798_v27 }
 0x399   :  { %3031 = vmatpush3.msra.mxu0 %v2811_v4  ;;  %3344 = vmatpush3.msra.mxu1 %v2848_v62  ;;  %v1299_v62 = vunpack.c.l.bf16 %v1258_v60  ;;  %v1243_v60 = vld [vmem:[#allocation5 + $0x30] sm:$0xff] }
 0x39a   :  { %3310 = vmatmul.mubr.msk.f32.gmra.mxu0 %vm698_vm4, %v2780_v5  ;;  %3032 = vmatprep.subr.mxu0 %v2840_v6  ;;  %v1057_v5 = vld [vmem:[%s4699_s9 + $0x68] sm:$0xff] }
 0x39b   :  { %3312 = vmatprep.mubr.msk.f32.mxu0 %vm3799_vm1, %v3798_v27  ;;  %3033 = vmatpush3.msra.mxu0 %v2808_v8  ;;  %v1055_v8 = vld [vmem:[%s4699_s9 + $0x58] sm:$0xff] }
 0x39c   :  { %3034 = vmatprep.subr.mxu0 %v2839_v10  ;;  %3345 = vmatprep.subr.mxu1 %v3798_v27  ;;  %v1053_v10 = vld [vmem:[%s4699_s9 + $0x48] sm:$0xff] }
 0x39d   :  { %3035 = vmatpush3.msra.mxu0 %v2807_v12  ;;  %3346 = vmatpush3.msra.mxu1 %v2847_v63  ;;  %v1051_v12 = vld [vmem:[%s4699_s9 + $0x38] sm:$0xff] }
 0x39e   :  { %3313 = vmatmul.mubr.msk.f32.gmra.mxu0 %vm698_vm4, %v697_v13  ;;  %3036 = vmatprep.subr.mxu0 %v2836_v14  ;;  %v1050_v13 = vld [vmem:[%s4699_s9 + $0x30] sm:$0xff]  ;;  %v1049_v14 = vld [vmem:[%s4699_s9 + $0x28] sm:$0xff]  ;;  %v1254_v63 = vld [vmem:[#allocation5 + $0x68] ss:$12 sps:$4 sm:$0xff]  }
 0x39f   :  { %3037 = vmatpush3.msra.mxu0 %v2804_v15  ;;  %3385 = vmatprep.subr.mxu1 %v3798_v27  ;;  %v1048_v15 = vld [vmem:[%s4699_s9 + $0x20] sm:$0xff] }
 0x3a0   :  { %3038 = vmatprep.subr.mxu0 %v2835_v17  ;;  %v1046_v17 = vld [vmem:[%s4699_s9 + $0x10] sm:$0xff] }
 0x3a1   :  { %3039 = vmatpush3.msra.mxu0 %v2803_v19  ;;  %v1044_v19 = vld [vmem:[%s4699_s9] sm:$0xff] }
 0x3a2   :  { %3040 = vmatprep.subr.mxu0 %v2832_v20 }
 0x3a3   :  { %3041 = vmatpush3.msra.mxu0 %v2800_v21 }
 0x3a4   :  { %3042 = vmatprep.subr.mxu0 %v2831_v23 }
 0x3a5   :  { %3043 = vmatpush3.msra.mxu0 %v2799_v25 }
 0x3a6   :  { %3044 = vmatprep.subr.mxu0 %v2828_v26 }
 0x3a7   :  { %3045 = vmatpush3.msra.mxu0 %v2796_v28 }
 0x3a8   :  { %3046 = vmatprep.subr.mxu0 %v2827_v30 }
 0x3a9   :  { %3047 = vmatpush3.msra.mxu0 %v2795_v32 }
 0x3aa   :  { %3048 = vmatprep.subr.mxu0 %v2824_v33 }
 0x3ab   :  { %3049 = vmatpush3.msra.mxu0 %v2792_v34 }
 0x3ac   :  { %3050 = vmatprep.subr.mxu0 %v2823_v36 }
 0x3ad   :  { %3051 = vmatpush3.msra.mxu0 %v2791_v38 }
 0x3ae   :  { %3052 = vmatprep.subr.mxu0 %v2820_v39 }
 0x3af   :  { %3053 = vmatpush3.msra.mxu0 %v2788_v40 }
 0x3b0   :  { %3054 = vmatprep.subr.mxu0 %v2819_v43 }
 0x3b1   :  { %3055 = vmatpush3.msra.mxu0 %v2787_v44  ;;  %v1151_v44 = vld [vmem:[#allocation7 + $0x48] sm:$0xff] }
 0x3b2   :  { %3056 = vmatprep.subr.mxu0 %v2816_v49  ;;  %v1313_v49 = vunpack.c.h.bf16 %v4296_v46 }
 0x3b3   :  { %3057 = vmatpush3.msra.mxu0 %v2784_v52  ;;  %v1311_v52 = vunpack.c.l.bf16 %v1266_v50  ;;  %v1247_v50 = vld [vmem:[#allocation5 + $0x48] sm:$0xff] }
 0x3b4   :  { %3058 = vmatprep.subr.mxu0 %v2815_v55  ;;  %v1308_v55 = vunpack.c.h.bf16 %v1262_v53 }
 0x3b5   :  { %3059 = vmatpush3.msra.mxu0 %v2783_v59  ;;  %v1305_v59 = vunpack.c.l.bf16 %v1262_v53  ;;  %v1245_v53 = vld [vmem:[#allocation5 + $0x3c] sm:$0xff] }
 0x3b6   :  { %3350 = vmatprep.subr.mxu0 %v3798_v27 }
 0x456   :  { %v774_v0 = vpop.f32.mrf.mxu0 }
 0x458   :  { %v3308_v57 = vpop.f32.mrf.mxu0 }
 0x459   :  { %v1293_v57 = vunpack.c.l.bf16 %v1254_v63 }
 0x45a   :  { %v779_v58 = vpop.f32.mrf.mxu0 }
 0x45b   :  { %953 = vmatprep.mubr.f32.mxu0 %v779_v58  ;;  %v1250_v58 = vld [vmem:[#allocation5 + $0x50] ss:$12 sps:$4 sm:$0xff]  }
 0x45c   :  { %v3311_v2 = vpop.f32.mrf.mxu0  ;;  %954 = vmatmul.mubr.f32.vlgmr.msra.gmra.mxu0 %v774_v0  ;;  %v1296_v0 = vunpack.c.h.bf16 %v1254_v63  ;;  %v1241_v63 = vld [vmem:[#allocation5 + $0x24] sm:$0xff] }
 0x45d   :  { %3351 = vmatpush3.msra.mxu0 %v1059_v1  ;;  %3382 = vmatprep.mubr.msk.f32.mxu0 %vm3799_vm1, %v3798_v27  ;;  %v1290_v1 = vunpack.c.h.bf16 %v1250_v58  ;;  %v1287_v2 = vunpack.c.l.bf16 %v1250_v58  ;;  %v1277_v58 = vunpack.c.h.bf16 %v1241_v63 }
 0x45e   :  { %v784_v4 = vpop.f32.mrf.mxu0  ;;  %3352 = vmatprep.subr.mxu0 %v3798_v27 }
 0x45f   :  { %3348 = vmatmul.mubr.f32.vlgmr.msra.gmra.mxu1 %v784_v4  ;;  %3353 = vmatpush3.msra.mxu0 %v1058_v3  ;;  %v1246_v3 = vld [vmem:[#allocation5 + $0x38] ss:$12 sps:$4 sm:$0xff]  }
 0x460   :  { %v3314_v6 = vpop.f32.mrf.mxu0  ;;  %3354 = vmatprep.subr.mxu0 %v3798_v27  ;;  %3389 = vmatprep.mubr.msk.f32.mxu1 %vm3799_vm1, %v3798_v27  ;;  %v1284_v4 = vunpack.c.h.bf16 %v1246_v3 }
 0x461   :  { %3355 = vmatpush3.msra.mxu0 %v1057_v5  ;;  %3386 = vmatpush3.msra.mxu1 %v1151_v44  ;;  %v1281_v5 = vunpack.c.l.bf16 %v1246_v3 }
 0x462   :  { %3356 = vmatprep.subr.mxu0 %v3798_v27  ;;  %3387 = vmatprep.subr.mxu1 %v3798_v27 }
 0x463   :  { %3357 = vmatpush3.msra.mxu0 %v1056_v7  ;;  %3388 = vmatpush3.msra.mxu1 %v1150_v45  ;;  %v1249_v45 = vld [vmem:[#allocation5 + $0x54] sm:$0xff] }
 0x464   :  { %3358 = vmatprep.subr.mxu0 %v3798_v27  ;;  %1315 = vmatprep.subr.mxu1 %v1313_v49 }
 0x465   :  { %3359 = vmatpush3.msra.mxu0 %v1055_v8 }
 0x466   :  { %3360 = vmatprep.subr.mxu0 %v3798_v27 }
 0x467   :  { %3361 = vmatpush3.msra.mxu0 %v1054_v9 }
 0x468   :  { %3362 = vmatprep.subr.mxu0 %v3798_v27 }
 0x469   :  { %3363 = vmatpush3.msra.mxu0 %v1053_v10 }
 0x46a   :  { %3364 = vmatprep.subr.mxu0 %v3798_v27 }
 0x46b   :  { %3365 = vmatpush3.msra.mxu0 %v1052_v11 }
 0x46c   :  { %3366 = vmatprep.subr.mxu0 %v3798_v27 }
 0x46d   :  { %3367 = vmatpush3.msra.mxu0 %v1051_v12 }
 0x46e   :  { %3368 = vmatprep.subr.mxu0 %v3798_v27 }
 0x46f   :  { %3369 = vmatpush3.msra.mxu0 %v1050_v13 }
 0x470   :  { %3370 = vmatprep.subr.mxu0 %v3798_v27 }
 0x471   :  { %3371 = vmatpush3.msra.mxu0 %v1049_v14 }
 0x472   :  { %3372 = vmatprep.subr.mxu0 %v3798_v27 }
 0x473   :  { %3373 = vmatpush3.msra.mxu0 %v1048_v15  ;;  %v1137_v15 = vld [vmem:[#allocation7 + $0x38] sm:$0x3] }
 0x474   :  { %3374 = vmatprep.subr.mxu0 %v3798_v27 }
 0x475   :  { %3375 = vmatpush3.msra.mxu0 %v1047_v16 }
 0x476   :  { %3376 = vmatprep.subr.mxu0 %v3798_v27 }
 0x477   :  { %3377 = vmatpush3.msra.mxu0 %v1046_v17 }
 0x478   :  { %3378 = vmatprep.subr.mxu0 %v3798_v27 }
 0x479   :  { %3379 = vmatpush3.msra.mxu0 %v1045_v18 }
 0x47a   :  { %3380 = vmatprep.subr.mxu0 %v3798_v27 }
 0x47b   :  { %3381 = vmatpush3.msra.mxu0 %v1044_v19 }
 0x47c   :  { %3392 = vmatprep.subr.mxu0 %v3798_v27 }
 0x51c   :  { %v3060_v20 = vpop.f32.mrf.mxu0 }
 0x51e   :  { %v3061_v21 = vpop.f32.mrf.mxu0 }
 0x51f   :  { %v3062_v23 = vadd.f32 %v3061_v21, %v3060_v20  ;;  %v1025_v24 = vpop.f32.mrf.mxu1  ;;  %v1263_v20 = vld [vmem:[#allocation5 + $0xa8] sm:$0xff] }
 0x521   :  { %v956_v25 = vadd.f32 %v3062_v23, %v2653_v22  ;;  %v3349_v26 = vpop.f32.mrf.mxu1  ;;  %v1312_v22 = vunpack.c.l.bf16 %v4296_v46  ;;  %v1261_v23 = vld [vmem:[#allocation5 + $0x9c] sm:$0xff] }
 0x522   :  { %v1309_v26 = vunpack.c.l.bf16 %v1263_v20 }
 0x523   :  { %v4283_v28 = vadd.f32 %v1025_v24, %v956_v25  ;;  %v1310_v24 = vunpack.c.h.bf16 %v1263_v20 }
 0x525   :  { %v4286_v29 = vmax.f32 %v4283_v28, 0.0 }
 0x527   :  { %v1030_v30 = vrot.slane %v4286_v29, 4  ;;  %v1036_v31 = vmul.f32 %v4286_v29, %v4286_v29 }
 0x529   :  { %v1031_v32 = vadd.f32 %v1030_v30, %v4286_v29  ;;  %v1037_v33 = vrot.slane %v1036_v31, 4  ;;  %v1259_v30 = vld [vmem:[#allocation5 + $0x90] sm:$0xff] }
 0x52b   :  { %v1032_v34 = vrot.slane %v1031_v32, 2  ;;  %v1038_v35 = vadd.f32 %v1037_v33, %v1036_v31  ;;  %v1307_v31 = vunpack.c.h.bf16 %v1261_v23  ;;  %v1257_v33 = vld [vmem:[#allocation5 + $0x84] sm:$0xff] }
 0x52d   :  { %v1033_v36 = vadd.f32 %v1032_v34, %v1031_v32  ;;  %v1039_v37 = vrot.slane %v1038_v35, 2  ;;  %v1306_v32 = vunpack.c.l.bf16 %v1261_v23  ;;  %v1304_v34 = vunpack.c.h.bf16 %v1259_v30  ;;  %v2878_v23 = vld [vmem:[%s4700_s10] sm:$0xff]  }
 0x52f   :  { %v1034_v38 = vrot.slane %v1033_v36, 1  ;;  %v1040_v39 = vadd.f32 %v1039_v37, %v1038_v35  ;;  %v1303_v35 = vunpack.c.l.bf16 %v1259_v30  ;;  %v1301_v37 = vunpack.c.h.bf16 %v1257_v33 }
 0x531   :  { %v1041_v40 = vrot.slane %v1040_v39, 1  ;;  %v1035_v41 = vadd.f32 %v1034_v38, %v1033_v36  ;;  %v1255_v36 = vld [vmem:[#allocation5 + $0x78] sm:$0xff]  ;;  %v1300_v38 = vunpack.c.l.bf16 %v1257_v33 }
 0x533   :  { %v1042_v42 = vadd.f32 %v1041_v40, %v1040_v39  ;;  %v1253_v39 = vld [vmem:[#allocation5 + $0x6c] sm:$0xff]  ;;  %v1298_v40 = vunpack.c.h.bf16 %v1255_v36 }
 0x534   :  { %v1294_v44 = vunpack.c.l.bf16 %v1253_v39 }
 0x535   :  { %v1043_v43 = vsel %vm497_vm2, %v1035_v41, %v1042_v42  ;;  %v1297_v41 = vunpack.c.l.bf16 %v1255_v36  ;;  %v1251_v42 = vld [vmem:[#allocation5 + $0x60] sm:$0xff]  ;;  %v1581_v36 = vld [vmem:[%s4702_s12 + $0x58] sm:$0xff] }
 0x536   :  { %3383 = vmatmul.mubr.f32.vlgmr.msra.gmra.mxu0 %v1043_v43  ;;  %v1295_v43 = vunpack.c.h.bf16 %v1253_v39  ;;  %v1292_v46 = vunpack.c.h.bf16 %v1251_v42  ;;  %v1291_v49 = vunpack.c.l.bf16 %v1251_v42  ;;  %v1578_v39 = vld [vmem:[%s4702_s12 + $0x40] sm:$0xff]  ;;  %v1575_v42 = vld [vmem:[%s4702_s12 + $0x28] sm:$0xff] }
 0x537   :  { %3424 = vmatprep.mubr.msk.f32.mxu0 %vm3799_vm1, %v3798_v27  ;;  %3393 = vmatpush3.msra.mxu0 %v1314_v51  ;;  %v1289_v51 = vunpack.c.h.bf16 %v1249_v45 }
 0x538   :  { %3394 = vmatprep.subr.mxu0 %v3798_v27 }
 0x539   :  { %3395 = vmatpush3.msra.mxu0 %v1311_v52  ;;  %v1288_v52 = vunpack.c.l.bf16 %v1249_v45  ;;  %v1572_v45 = vld [vmem:[%s4702_s12 + $0x10] sm:$0xff] }
 0x53a   :  { %3396 = vmatprep.subr.mxu0 %v3798_v27 }
 0x53b   :  { %3397 = vmatpush3.msra.mxu0 %v1308_v55  ;;  %v1286_v55 = vunpack.c.h.bf16 %v1247_v50 }
 0x53c   :  { %3398 = vmatprep.subr.mxu0 %v3798_v27 }
 0x53d   :  { %3399 = vmatpush3.msra.mxu0 %v1305_v59  ;;  %v1285_v59 = vunpack.c.l.bf16 %v1247_v50  ;;  %v2655_v50 = vld [vmem:[#allocation7 + $0x50] ss:$0 sm:$0xff] }
 0x53e   :  { %3400 = vmatprep.subr.mxu0 %v3798_v27 }
 0x53f   :  { %3401 = vmatpush3.msra.mxu0 %v1302_v61  ;;  %v1283_v61 = vunpack.c.h.bf16 %v1245_v53 }
 0x540   :  { %3402 = vmatprep.subr.mxu0 %v3798_v27 }
 0x541   :  { %3403 = vmatpush3.msra.mxu0 %v1299_v62  ;;  %v1282_v62 = vunpack.c.l.bf16 %v1245_v53 }
 0x542   :  { %3404 = vmatprep.subr.mxu0 %v3798_v27 }
 0x543   :  { %3405 = vmatpush3.msra.mxu0 %v1296_v0  ;;  %v1280_v0 = vunpack.c.h.bf16 %v1243_v60 }
 0x544   :  { %3406 = vmatprep.subr.mxu0 %v3798_v27 }
 0x545   :  { %3407 = vmatpush3.msra.mxu0 %v1293_v57  ;;  %v1279_v57 = vunpack.c.l.bf16 %v1243_v60 }
 0x546   :  { %3408 = vmatprep.subr.mxu0 %v3798_v27 }
 0x547   :  { %3409 = vmatpush3.msra.mxu0 %v1290_v1  ;;  %v1276_v1 = vunpack.c.l.bf16 %v1241_v63 }
 0x548   :  { %3410 = vmatprep.subr.mxu0 %v3798_v27 }
 0x549   :  { %3411 = vmatpush3.msra.mxu0 %v1287_v2  ;;  %v1242_v2 = vld [vmem:[#allocation5 + $0x20] ss:$12 sps:$4 sm:$0xff]  }
 0x54a   :  { %3412 = vmatprep.subr.mxu0 %v3798_v27  ;;  %v1278_v3 = vunpack.c.h.bf16 %v1242_v2 }
 0x54b   :  { %3413 = vmatpush3.msra.mxu0 %v1284_v4  ;;  %v1239_v4 = vld [vmem:[#allocation5 + $0x18] sm:$0xff] }
 0x54c   :  { %3414 = vmatprep.subr.mxu0 %v3798_v27 }
 0x54d   :  { %3415 = vmatpush3.msra.mxu0 %v1281_v5  ;;  %v1274_v5 = vunpack.c.h.bf16 %v1239_v4 }
 0x54e   :  { %3416 = vmatprep.subr.mxu0 %v3798_v27 }
 0x54f   :  { %3417 = vmatpush3.msra.mxu0 %v1278_v3 }
 0x550   :  { %3418 = vmatprep.subr.mxu0 %v3798_v27 }
 0x5f6   :  { %v1126_v6 = vpop.f32.mrf.mxu0 }
 0x5f7   :  { %v1130_v7 = vmul.f32 0.03125, %v1126_v6  ;;  %v1273_v6 = vunpack.c.l.bf16 %v1239_v4 }
 0x5f8   :  { %v3384_v8 = vpop.f32.mrf.mxu0 }
 0x5f9   :  { %v1131_v9 = vmul.f32 %v1130_v7, %v1130_v7  ;;  %v1237_v8 = vld [vmem:[#allocation5 + $0xc] sm:$0xff] }
 0x5fb   :  { %v1133_v10 = vrot.slane %v1131_v9, 7  ;;  %v1271_v9 = vunpack.c.h.bf16 %v1237_v8 }
 0x5fd   :  { %v1135_v11 = vsub.f32 %v1130_v7, %v1133_v10  ;;  %v1238_v10 = vld [vmem:[#allocation5 + $0x8] ss:$12 sps:$4 sm:$0xff]  }
 0x5ff   :  { %v1136_v12 = vmax.f32 %v1135_v11, 0.0  ;;  %v1270_v11 = vunpack.c.l.bf16 %v1237_v8 }
 0x601   :  { %v1138_v13 = vadd.f32 1e-05, %v1136_v12  ;;  %v1272_v12 = vunpack.c.h.bf16 %v1238_v10 }
 0x603   :  { %3633 = vrsqrt.f32 %v1138_v13  ;;  %v1235_v13 = vld [vmem:[#allocation5] sm:$0xff] }
 0x610   :  { %v3634_v14 = vpop.eup %3633 }
 0x611   :  { %v1141_v16 = vrot.slane %v3634_v14, 1  ;;  %v1268_v14 = vunpack.c.h.bf16 %v1235_v13 }
 0x613   :  { %v1143_v17 = vmul.f32 %v1141_v16, %v1137_v15  ;;  %v1269_v16 = vunpack.c.l.bf16 %v1238_v10 }
 0x615   :  { %v1144_v18 = vmul.f32 %v1143_v17, %v1130_v7  ;;  %v1275_v7 = vunpack.c.l.bf16 %v1242_v2 }
 0x617   :  { %v1146_v19 = vrot.slane %v1144_v18, 7  ;;  %3419 = vmatpush3.msra.mxu0 %v1275_v7 }
 0x618   :  { %3420 = vmatprep.subr.mxu0 %v3798_v27 }
 0x619   :  { %v1148_v21 = vsub.f32 %v1137_v15, %v1146_v19  ;;  %3421 = vmatpush3.msra.mxu0 %v1272_v12  ;;  %v1267_v15 = vunpack.c.l.bf16 %v1235_v13  ;;  %v1676_v12 = vld [vmem:[#allocation7 + $0x60] sm:$0xff] }
 0x61a   :  { %3422 = vmatprep.subr.mxu0 %v3798_v27  ;;  %v4411_v13 = vld [vmem:[%s4695_s5 + $0xb4] sm:$0xff] }
 0x61b   :  { %v1149_v25 = vsel %vm497_vm2, %v1143_v17, %v1148_v21  ;;  %3423 = vmatpush3.msra.mxu0 %v1269_v16 }
 0x61c   :  { %3390 = vmatmul.mubr.msk.f32.vlgmr.msra.gmra.mxu1 %vm698_vm4, %v1149_v25  ;;  %v1584_v25 = vld [vmem:[%s4702_s12 + $0x70] sm:$0xff] }
 0x61d   :  { %1316 = vmatpush1.msra.mxu1 %v1312_v22  ;;  %1379 = vmatprep.mubr.f32.mxu1 %v3798_v27 }
 0x61e   :  { %1317 = vmatprep.subr.mxu1 %v1310_v24  ;;  %v2879_v24 = vunpack.c.l.bf16 %v2878_v23 }
 0x61f   :  { %1318 = vmatpush1.msra.mxu1 %v1309_v26  ;;  %v1583_v26 = vld [vmem:[%s4702_s12 + $0x68] sm:$0xff] }
 0x620   :  { %1319 = vmatprep.subr.mxu1 %v1307_v31 }
 0x621   :  { %1320 = vmatpush1.msra.mxu1 %v1306_v32 }
 0x622   :  { %1321 = vmatprep.subr.mxu1 %v1304_v34  ;;  %v2880_v34 = vunpack.c.h.bf16 %v2878_v23 }
 0x623   :  { %1322 = vmatpush1.msra.mxu1 %v1303_v35  ;;  %v1582_v35 = vld [vmem:[%s4702_s12 + $0x60] sm:$0xff] }
 0x624   :  { %1323 = vmatprep.subr.mxu1 %v1301_v37  ;;  %v1580_v37 = vld [vmem:[%s4702_s12 + $0x50] sm:$0xff] }
 0x625   :  { %1324 = vmatpush1.msra.mxu1 %v1300_v38  ;;  %v1579_v38 = vld [vmem:[%s4702_s12 + $0x48] sm:$0xff] }
 0x626   :  { %1325 = vmatprep.subr.mxu1 %v1298_v40  ;;  %v1577_v40 = vld [vmem:[%s4702_s12 + $0x38] sm:$0xff] }
 0x627   :  { %1326 = vmatpush1.msra.mxu1 %v1297_v41  ;;  %v1576_v41 = vld [vmem:[%s4702_s12 + $0x30] sm:$0xff] }
 0x628   :  { %1327 = vmatprep.subr.mxu1 %v1295_v43  ;;  %v1574_v43 = vld [vmem:[%s4702_s12 + $0x20] sm:$0xff] }
 0x629   :  { %1328 = vmatpush1.msra.mxu1 %v1294_v44  ;;  %v1573_v44 = vld [vmem:[%s4702_s12 + $0x18] sm:$0xff] }
 0x62a   :  { %1329 = vmatprep.subr.mxu1 %v1292_v46  ;;  %v1571_v46 = vld [vmem:[%s4702_s12 + $0x8] sm:$0xff] }
 0x62b   :  { %1330 = vmatpush1.msra.mxu1 %v1291_v49  ;;  %v1570_v49 = vld [vmem:[%s4702_s12] sm:$0xff] }
 0x62c   :  { %1331 = vmatprep.subr.mxu1 %v1289_v51 }
 0x62d   :  { %1332 = vmatpush1.msra.mxu1 %v1288_v52 }
 0x62e   :  { %1333 = vmatprep.subr.mxu1 %v1286_v55 }
 0x62f   :  { %1334 = vmatpush1.msra.mxu1 %v1285_v59 }
 0x630   :  { %1335 = vmatprep.subr.mxu1 %v1283_v61 }
 0x631   :  { %1336 = vmatpush1.msra.mxu1 %v1282_v62 }
 0x632   :  { %1337 = vmatprep.subr.mxu1 %v1280_v0 }
 0x633   :  { %1338 = vmatpush1.msra.mxu1 %v1279_v57 }
 0x634   :  { %1339 = vmatprep.subr.mxu1 %v1277_v58 }
 0x635   :  { %1340 = vmatpush1.msra.mxu1 %v1276_v1 }
 0x636   :  { %1341 = vmatprep.subr.mxu1 %v1274_v5 }
 0x637   :  { %1342 = vmatpush1.msra.mxu1 %v1273_v6 }
 0x638   :  { %1343 = vmatprep.subr.mxu1 %v1271_v9 }
 0x639   :  { %1344 = vmatpush1.msra.mxu1 %v1270_v11 }
 0x63a   :  { %1345 = vmatprep.subr.mxu1 %v1268_v14  ;;  %v1840_v14 = vunpack.c.h.bf16 %v4411_v13 }
 0x63b   :  { %1346 = vmatpush1.msra.mxu1 %v1267_v15  ;;  %v1793_v15 = vld [vmem:[%s4695_s5 + $0xb0] ss:$12 sps:$4 sm:$0xff]  }
 0x63c   :  { %3436 = vmatprep.subr.mxu1 %v3798_v27  ;;  %v1841_v16 = vunpack.c.h.bf16 %v1793_v15 }
 0x6dc   :  { %v1221_v17 = vpop.f32.mrf.mxu1 }
 0x6dd   :  { %v1228_v18 = vrot.slane %v1221_v17, %v4129_v47  ;;  %v1233_v21 = vrot.slane %v1221_v17, %v4131_v48  ;;  %v1838_v17 = vunpack.c.l.bf16 %v1793_v15 }
 0x6de   :  { %v3391_v19 = vpop.f32.mrf.mxu1 }
 0x6df   :  { %v1229_v20 = vmul.f32 %v1228_v18, %v4286_v29  ;;  %v1585_v29 = vld [vmem:[%s4702_s12 + $0x78] sm:$0xff] }
 0x6e0   :  { %v1789_v18 = vld [vmem:[%s4695_s5 + $0x98] ss:$12 sps:$4 sm:$0xff]  }
 0x6e1   :  { %v1234_v22 = vadd.f32 %v1233_v21, %v1229_v20  ;;  %v1835_v19 = vunpack.c.h.bf16 %v1789_v18  ;;  %v1832_v20 = vunpack.c.l.bf16 %v1789_v18  ;;  %v1785_v21 = vld [vmem:[%s4695_s5 + $0x80] ss:$12 sps:$4 sm:$0xff]  }
 0x6e2   :  { %v1826_v23 = vunpack.c.l.bf16 %v1785_v21 }
 0x6e3   :  { %1380 = vmatmul.mubr.f32.vlgmr.msra.gmra.mxu1 %v1234_v22  ;;  %3425 = vmatmul.mubr.f32.vlgmr.msra.gmra.mxu0 %v1234_v22  ;;  %v1829_v22 = vunpack.c.h.bf16 %v1785_v21 }
 0x6e4   :  { %3468 = vmatprep.mubr.msk.f32.mxu1 %vm3799_vm1, %v3798_v27  ;;  %3433 = vmatprep.mubr.msk.f32.mxu0 %vm1465_vm5, %v2879_v24  ;;  %v1781_v24 = vld [vmem:[%s4695_s5 + $0x68] ss:$12 sps:$4 sm:$0xff]  }
 0x6e5   :  { %3437 = vmatpush3.msra.mxu1 %v1585_v29  ;;  %v1823_v29 = vunpack.c.h.bf16 %v1781_v24 }
 0x6e6   :  { %3438 = vmatprep.subr.mxu1 %v3798_v27 }
 0x6e7   :  { %3439 = vmatpush3.msra.mxu1 %v1584_v25  ;;  %v1820_v25 = vunpack.c.l.bf16 %v1781_v24 }
 0x6e8   :  { %3440 = vmatprep.subr.mxu1 %v3798_v27 }
 0x6e9   :  { %3441 = vmatpush3.msra.mxu1 %v1583_v26  ;;  %v1777_v26 = vld [vmem:[%s4695_s5 + $0x50] ss:$12 sps:$4 sm:$0xff]  }
 0x6ea   :  { %3442 = vmatprep.subr.mxu1 %v3798_v27 }
 0x6eb   :  { %3443 = vmatpush3.msra.mxu1 %v1582_v35 }
 0x6ec   :  { %3444 = vmatprep.subr.mxu1 %v3798_v27 }
 0x6ed   :  { %3445 = vmatpush3.msra.mxu1 %v1581_v36 }
 0x6ee   :  { %3446 = vmatprep.subr.mxu1 %v3798_v27 }
 0x6ef   :  { %3447 = vmatpush3.msra.mxu1 %v1580_v37 }
 0x6f0   :  { %3448 = vmatprep.subr.mxu1 %v3798_v27 }
 0x6f1   :  { %3449 = vmatpush3.msra.mxu1 %v1579_v38 }
 0x6f2   :  { %3450 = vmatprep.subr.mxu1 %v3798_v27 }
 0x6f3   :  { %3451 = vmatpush3.msra.mxu1 %v1578_v39 }
 0x6f4   :  { %3452 = vmatprep.subr.mxu1 %v3798_v27 }
 0x6f5   :  { %3453 = vmatpush3.msra.mxu1 %v1577_v40 }
 0x6f6   :  { %3454 = vmatprep.subr.mxu1 %v3798_v27 }
 0x6f7   :  { %3455 = vmatpush3.msra.mxu1 %v1576_v41 }
 0x6f8   :  { %3456 = vmatprep.subr.mxu1 %v3798_v27 }
 0x6f9   :  { %3457 = vmatpush3.msra.mxu1 %v1575_v42 }
 0x6fa   :  { %3458 = vmatprep.subr.mxu1 %v3798_v27 }
 0x6fb   :  { %3459 = vmatpush3.msra.mxu1 %v1574_v43 }
 0x6fc   :  { %3460 = vmatprep.subr.mxu1 %v3798_v27 }
 0x6fd   :  { %3461 = vmatpush3.msra.mxu1 %v1573_v44  ;;  %v1663_v44 = vld [vmem:[#allocation7 + $0x58] sm:$0x3] }
 0x6fe   :  { %3462 = vmatprep.subr.mxu1 %v3798_v27 }
 0x6ff   :  { %3463 = vmatpush3.msra.mxu1 %v1572_v45 }
 0x700   :  { %3464 = vmatprep.subr.mxu1 %v3798_v27 }
 0x701   :  { %3465 = vmatpush3.msra.mxu1 %v1571_v46 }
 0x702   :  { %3466 = vmatprep.subr.mxu1 %v3798_v27 }
 0x703   :  { %3467 = vmatpush3.msra.mxu1 %v1570_v49 }
 0x704   :  { %3476 = vmatprep.subr.mxu1 %v1841_v16 }
 0x7a3   :  { %v1381_v30 = vpop.f32.mrf.mxu1  ;;  %v1452_v31 = vpop.f32.mrf.mxu0 }
 0x7a4   :  { %3427 = vmatprep.subr.mxu0 %v1452_v31 }
 0x7a5   :  { %v1383_v32 = vpop.f32.mrf.mxu1  ;;  %v3426_v33 = vpop.f32.mrf.mxu0  ;;  %3428 = vmatpush3.msra.mxu0 %v1452_v31  ;;  %v1814_v31 = vunpack.c.l.bf16 %v1777_v26 }
 0x7a6   :  { %3429 = vmatprep.subr.mxu0 %v1383_v32 }
 0x7a7   :  { %3430 = vmatpush3.msra.mxu0 %v1383_v32  ;;  %v1773_v32 = vld [vmem:[%s4695_s5 + $0x38] ss:$12 sps:$4 sm:$0xff]  }
 0x7a8   :  { %3431 = vmatprep.subr.mxu0 %v1381_v30  ;;  %v1811_v33 = vunpack.c.h.bf16 %v1773_v32 }
 0x7a9   :  { %3432 = vmatpush3.msra.mxu0 %v1381_v30  ;;  %v1817_v30 = vunpack.c.h.bf16 %v1777_v26 }
 0x7aa   :  { %3434 = vmatmul.mubr.msk.f32.vlgmr.msra.gmra.mxu0 %vm1465_vm5, %v2880_v34  ;;  %3471 = vmatprep.subr.mxu0 %v3798_v27  ;;  %v1808_v34 = vunpack.c.l.bf16 %v1773_v32  ;;  %v1766_v32 = vld [vmem:[%s4695_s5 + $0x18] sm:$0xff] }
 0x7ab   :  { %3473 = vmatprep.mubr.msk.f32.mxu0 %vm3799_vm1, %v3798_v27  ;;  %3472 = vmatpush3.msra.mxu0 %v1676_v12 }
 0x7ac   :  { %1842 = vmatprep.subr.mxu0 %v1840_v14  ;;  %v1774_v14 = vld [vmem:[%s4695_s5 + $0x48] sm:$0xff] }
 0x7ad   :  { %v1813_v18 = vunpack.c.h.bf16 %v1774_v14 }
 0x86a   :  { %v3435_v51 = vpop.f32.mrf.mxu0 }
 0x86b   :  { %v1544_v52 = vadd.f32 %v3435_v51, %v2655_v50  ;;  %v1790_v51 = vld [vmem:[%s4695_s5 + $0xa8] sm:$0xff] }
 0x86c   :  { %v1538_v53 = vpop.f32.mrf.mxu0 }
 0x86d   :  { %v1548_v55 = vadd.f32 %v1544_v52, %v4082_v56  ;;  %v1539_v59 = vadd.f32 %v2655_v50, %v1538_v53  ;;  %v1839_v53 = vunpack.c.l.bf16 %v4411_v13 }
 0x86f   :  { %v4396_v60 = vmax.f32 %v1548_v55, 0.0  ;;  %1550 = vst [vmem:[#allocation9 + $0x8] sm:$0xff] %v1548_v55  ;;  %v1547_v61 = vadd.f32 %v1539_v59, %v4080_v54  ;;  %v1788_v55 = vld [vmem:[%s4695_s5 + $0x9c] sm:$0xff]  ;;  %v1837_v59 = vunpack.c.h.bf16 %v1790_v51 }
 0x871   :  { %v4399_v62 = vmax.f32 %v1547_v61, 0.0  ;;  %1549 = vst [vmem:[#allocation9] sm:$0xff] %v1547_v61  ;;  %v1561_v63 = vmul.f32 %v4396_v60, %v4396_v60 }
 0x873   :  { %v1553_v0 = vadd.f32 %v4396_v60, %v4399_v62  ;;  %v1560_v57 = vmul.f32 %v4399_v62, %v4399_v62 }
 0x875   :  { %v1554_v58 = vrot.slane %v1553_v0, 4  ;;  %v1562_v56 = vadd.f32 %v1561_v63, %v1560_v57  ;;  %v1836_v63 = vunpack.c.l.bf16 %v1790_v51  ;;  %v1834_v57 = vunpack.c.h.bf16 %v1788_v55 }
 0x877   :  { %v1555_v1 = vadd.f32 %v1554_v58, %v1553_v0  ;;  %v1563_v2 = vrot.slane %v1562_v56, 4  ;;  %v1786_v0 = vld [vmem:[%s4695_s5 + $0x90] sm:$0xff]  ;;  %v1833_v58 = vunpack.c.l.bf16 %v1788_v55 }
 0x879   :  { %v1556_v3 = vrot.slane %v1555_v1, 2  ;;  %v1564_v4 = vadd.f32 %v1563_v2, %v1562_v56  ;;  %v1784_v56 = vld [vmem:[%s4695_s5 + $0x84] sm:$0xff]  ;;  %v1830_v2 = vunpack.c.l.bf16 %v1786_v0 }
 0x87b   :  { %v1557_v5 = vadd.f32 %v1556_v3, %v1555_v1  ;;  %v1565_v54 = vrot.slane %v1564_v4, 2  ;;  %v1831_v1 = vunpack.c.h.bf16 %v1786_v0  ;;  %v1782_v3 = vld [vmem:[%s4695_s5 + $0x78] sm:$0xff] }
 0x87d   :  { %v1558_v6 = vrot.slane %v1557_v5, 1  ;;  %v1566_v7 = vadd.f32 %v1565_v54, %v1564_v4  ;;  %v1828_v4 = vunpack.c.h.bf16 %v1784_v56  ;;  %v1780_v54 = vld [vmem:[%s4695_s5 + $0x6c] sm:$0xff] }
 0x87f   :  { %v1567_v8 = vrot.slane %v1566_v7, 1  ;;  %v1559_v9 = vadd.f32 %v1558_v6, %v1557_v5  ;;  %v1827_v5 = vunpack.c.l.bf16 %v1784_v56  ;;  %v1825_v6 = vunpack.c.h.bf16 %v1782_v3  ;;  %v2937_v56 = vld [vmem:[#allocation2 + $0x8] sm:$0xff]  }
 0x881   :  { %v1568_v10 = vadd.f32 %v1567_v8, %v1566_v7  ;;  %v1824_v7 = vunpack.c.l.bf16 %v1782_v3  ;;  %v1778_v8 = vld [vmem:[%s4695_s5 + $0x60] sm:$0xff]  ;;  %v2147_v3 = vld [vmem:[%s4696_s6 + $0x78] sm:$0xff] }
 0x882   :  { %v1819_v12 = vunpack.c.h.bf16 %v1778_v8  ;;  %v1818_v13 = vunpack.c.l.bf16 %v1778_v8  ;;  %v2142_v8 = vld [vmem:[%s4696_s6 + $0x50] sm:$0xff] }
 0x883   :  { %v1569_v11 = vsel %vm497_vm2, %v1559_v9, %v1568_v10  ;;  %v1822_v9 = vunpack.c.h.bf16 %v1780_v54  ;;  %v1821_v10 = vunpack.c.l.bf16 %v1780_v54  ;;  %v2145_v54 = vld [vmem:[%s4696_s6 + $0x68] sm:$0xff] }
 0x884   :  { %3469 = vmatmul.mubr.f32.vlgmr.msra.gmra.mxu1 %v1569_v11  ;;  %v1776_v11 = vld [vmem:[%s4695_s5 + $0x54] sm:$0xff] }
 0x885   :  { %3477 = vmatpush3.msra.mxu1 %v1841_v16  ;;  %v1816_v15 = vunpack.c.h.bf16 %v1776_v11  ;;  %v1815_v16 = vunpack.c.l.bf16 %v1776_v11  ;;  %v2139_v11 = vld [vmem:[%s4696_s6 + $0x38] sm:$0xff] }
 0x886   :  { %3478 = vmatprep.subr.mxu1 %v1838_v17 }
 0x887   :  { %3479 = vmatpush3.msra.mxu1 %v1838_v17  ;;  %v1772_v17 = vld [vmem:[%s4695_s5 + $0x3c] sm:$0xff] }
 0x888   :  { %3480 = vmatprep.subr.mxu1 %v1835_v19  ;;  %v1810_v21 = vunpack.c.h.bf16 %v1772_v17 }
 0x889   :  { %3481 = vmatpush3.msra.mxu1 %v1835_v19  ;;  %v1812_v19 = vunpack.c.l.bf16 %v1774_v14  ;;  %v2136_v14 = vld [vmem:[%s4696_s6 + $0x20] sm:$0xff] }
 0x88a   :  { %3482 = vmatprep.subr.mxu1 %v1832_v20 }
 0x88b   :  { %3483 = vmatpush3.msra.mxu1 %v1832_v20  ;;  %v1770_v20 = vld [vmem:[%s4695_s5 + $0x30] sm:$0xff] }
 0x88c   :  { %3484 = vmatprep.subr.mxu1 %v1829_v22  ;;  %v1807_v24 = vunpack.c.h.bf16 %v1770_v20 }
 0x88d   :  { %3485 = vmatpush3.msra.mxu1 %v1829_v22  ;;  %v1809_v22 = vunpack.c.l.bf16 %v1772_v17  ;;  %v2133_v17 = vld [vmem:[%s4696_s6 + $0x8] sm:$0xff] }
 0x88e   :  { %3486 = vmatprep.subr.mxu1 %v1826_v23 }
 0x88f   :  { %3487 = vmatpush3.msra.mxu1 %v1826_v23  ;;  %v1768_v23 = vld [vmem:[%s4695_s5 + $0x24] sm:$0xff] }
 0x890   :  { %3488 = vmatprep.subr.mxu1 %v1823_v29  ;;  %v1803_v26 = vunpack.c.l.bf16 %v1768_v23 }
 0x891   :  { %3489 = vmatpush3.msra.mxu1 %v1823_v29  ;;  %v1806_v29 = vunpack.c.l.bf16 %v1770_v20 }
 0x892   :  { %3490 = vmatprep.subr.mxu1 %v1820_v25 }
 0x893   :  { %3491 = vmatpush3.msra.mxu1 %v1820_v25  ;;  %v1804_v25 = vunpack.c.h.bf16 %v1768_v23 }
 0x894   :  { %3492 = vmatprep.subr.mxu1 %v1817_v30 }
 0x895   :  { %3493 = vmatpush3.msra.mxu1 %v1817_v30  ;;  %v1769_v30 = vld [vmem:[%s4695_s5 + $0x20] ss:$12 sps:$4 sm:$0xff]  }
 0x896   :  { %3494 = vmatprep.subr.mxu1 %v1814_v31 }
 0x897   :  { %3495 = vmatpush3.msra.mxu1 %v1814_v31  ;;  %v1805_v31 = vunpack.c.h.bf16 %v1769_v30 }
 0x898   :  { %3496 = vmatprep.subr.mxu1 %v1811_v33 }
 0x899   :  { %3497 = vmatpush3.msra.mxu1 %v1811_v33  ;;  %v1801_v33 = vunpack.c.h.bf16 %v1766_v32 }
 0x89a   :  { %3498 = vmatprep.subr.mxu1 %v1808_v34 }
 0x89b   :  { %3499 = vmatpush3.msra.mxu1 %v1808_v34  ;;  %v1800_v34 = vunpack.c.l.bf16 %v1766_v32 }
 0x89c   :  { %3500 = vmatprep.subr.mxu1 %v1805_v31 }
 0x89d   :  { %3501 = vmatpush3.msra.mxu1 %v1805_v31 }
 0x944   :  { %v1652_v35 = vpop.f32.mrf.mxu1 }
 0x945   :  { %v1656_v36 = vmul.f32 0.0078125, %v1652_v35  ;;  %v1802_v35 = vunpack.c.l.bf16 %v1769_v30 }
 0x946   :  { %v3470_v37 = vpop.f32.mrf.mxu1 }
 0x947   :  { %v1657_v38 = vmul.f32 %v1656_v36, %v1656_v36  ;;  %3502 = vmatprep.subr.mxu1 %v1802_v35 }
 0x948   :  { %3503 = vmatpush3.msra.mxu1 %v1802_v35 }
 0x949   :  { %v1659_v39 = vrot.slane %v1657_v38, 7  ;;  %v1765_v38 = vld [vmem:[%s4695_s5 + $0x8] ss:$12 sps:$4 sm:$0xff]  }
 0x94b   :  { %v1661_v40 = vsub.f32 %v1656_v36, %v1659_v39 }
 0x94d   :  { %v1662_v41 = vmax.f32 %v1661_v40, 0.0  ;;  %v1799_v40 = vunpack.c.h.bf16 %v1765_v38 }
 0x94f   :  { %v1664_v42 = vadd.f32 1e-05, %v1662_v41  ;;  %v1762_v41 = vld [vmem:[%s4695_s5] sm:$0xff]  ;;  %3504 = vmatprep.subr.mxu1 %v1799_v40 }
 0x950   :  { %3505 = vmatpush3.msra.mxu1 %v1799_v40 }
 0x951   :  { %3635 = vrsqrt.f32 %v1664_v42  ;;  %v1795_v42 = vunpack.c.h.bf16 %v1762_v41 }
 0x95e   :  { %v3636_v43 = vpop.eup %3635 }
 0x95f   :  { %v1667_v45 = vrot.slane %v3636_v43, 1  ;;  %v1794_v43 = vunpack.c.l.bf16 %v1762_v41 }
 0x961   :  { %v1669_v46 = vmul.f32 %v1667_v45, %v1663_v44 }
 0x963   :  { %v1670_v49 = vmul.f32 %v1669_v46, %v1656_v36  ;;  %v1764_v36 = vld [vmem:[%s4695_s5 + $0xc] sm:$0xff] }
 0x964   :  { %v1798_v37 = vunpack.c.h.bf16 %v1764_v36  ;;  %v1797_v39 = vunpack.c.l.bf16 %v1764_v36 }
 0x965   :  { %v1672_v50 = vrot.slane %v1670_v49, 7 }
 0x967   :  { %v1674_v52 = vsub.f32 %v1663_v44, %v1672_v50  ;;  %v1796_v44 = vunpack.c.l.bf16 %v1765_v38 }
 0x969   :  { %v1675_v61 = vsel %vm497_vm2, %v1669_v46, %v1674_v52  ;;  %3506 = vmatprep.subr.mxu1 %v1796_v44 }
 0x96a   :  { %3474 = vmatmul.mubr.msk.f32.vlgmr.msra.gmra.mxu0 %vm606_vm3, %v1675_v61  ;;  %3507 = vmatpush3.msra.mxu1 %v1796_v44 }
 0x96b   :  { %1843 = vmatpush1.msra.mxu0 %v1839_v53  ;;  %1906 = vmatprep.mubr.f32.mxu0 %v3798_v27 }
 0x96c   :  { %1844 = vmatprep.subr.mxu0 %v1837_v59  ;;  %3564 = vmatprep.subr.mxu1 %v3798_v27  ;;  %v2882_v59 = vld [vmem:[#allocation2] sm:$0xff]  }
 0x96d   :  { %1845 = vmatpush1.msra.mxu0 %v1836_v63  ;;  %v2883_v61 = vunpack.c.l.bf16 %v2882_v59 }
 0x96e   :  { %1846 = vmatprep.subr.mxu0 %v1834_v57 }
 0x96f   :  { %1847 = vmatpush1.msra.mxu0 %v1833_v58 }
 0x970   :  { %1848 = vmatprep.subr.mxu0 %v1831_v1  ;;  %v2884_v1 = vunpack.c.h.bf16 %v2882_v59 }
 0x971   :  { %1849 = vmatpush1.msra.mxu0 %v1830_v2  ;;  %v2887_v2 = vunpack.c.l.bf16 %v2937_v56 }
 0x972   :  { %1850 = vmatprep.subr.mxu0 %v1828_v4  ;;  %v2888_v4 = vunpack.c.h.bf16 %v2937_v56 }
 0x973   :  { %1851 = vmatpush1.msra.mxu0 %v1827_v5  ;;  %v2146_v5 = vld [vmem:[%s4696_s6 + $0x70] sm:$0xff] }
 0x974   :  { %1852 = vmatprep.subr.mxu0 %v1825_v6  ;;  %v2144_v6 = vld [vmem:[%s4696_s6 + $0x60] sm:$0xff] }
 0x975   :  { %1853 = vmatpush1.msra.mxu0 %v1824_v7  ;;  %v2143_v7 = vld [vmem:[%s4696_s6 + $0x58] sm:$0xff] }
 0x976   :  { %1854 = vmatprep.subr.mxu0 %v1822_v9  ;;  %v2141_v9 = vld [vmem:[%s4696_s6 + $0x48] sm:$0xff] }
 0x977   :  { %1855 = vmatpush1.msra.mxu0 %v1821_v10  ;;  %v2140_v10 = vld [vmem:[%s4696_s6 + $0x40] sm:$0xff] }
 0x978   :  { %1856 = vmatprep.subr.mxu0 %v1819_v12  ;;  %v2138_v12 = vld [vmem:[%s4696_s6 + $0x30] sm:$0xff] }
 0x979   :  { %1857 = vmatpush1.msra.mxu0 %v1818_v13  ;;  %v2137_v13 = vld [vmem:[%s4696_s6 + $0x28] sm:$0xff] }
 0x97a   :  { %1858 = vmatprep.subr.mxu0 %v1816_v15  ;;  %v2135_v15 = vld [vmem:[%s4696_s6 + $0x18] sm:$0xff] }
 0x97b   :  { %1859 = vmatpush1.msra.mxu0 %v1815_v16  ;;  %v2134_v16 = vld [vmem:[%s4696_s6 + $0x10] sm:$0xff] }
 0x97c   :  { %1860 = vmatprep.subr.mxu0 %v1813_v18  ;;  %v2132_v18 = vld [vmem:[%s4696_s6] sm:$0xff] }
 0x97d   :  { %1861 = vmatpush1.msra.mxu0 %v1812_v19  ;;  %v2659_v19 = vld [vmem:[#allocation7 + $0x18] ss:$0 sm:$0xff] }
 0x97e   :  { %1862 = vmatprep.subr.mxu0 %v1810_v21 }
 0x97f   :  { %1863 = vmatpush1.msra.mxu0 %v1809_v22 }
 0x980   :  { %1864 = vmatprep.subr.mxu0 %v1807_v24 }
 0x981   :  { %1865 = vmatpush1.msra.mxu0 %v1806_v29 }
 0x982   :  { %1866 = vmatprep.subr.mxu0 %v1804_v25 }
 0x983   :  { %1867 = vmatpush1.msra.mxu0 %v1803_v26 }
 0x984   :  { %1868 = vmatprep.subr.mxu0 %v1801_v33 }
 0x985   :  { %1869 = vmatpush1.msra.mxu0 %v1800_v34 }
 0x986   :  { %1870 = vmatprep.subr.mxu0 %v1798_v37 }
 0x987   :  { %1871 = vmatpush1.msra.mxu0 %v1797_v39 }
 0x988   :  { %1872 = vmatprep.subr.mxu0 %v1795_v42 }
 0x989   :  { %1873 = vmatpush1.msra.mxu0 %v1794_v43 }
 0xa2a   :  { %v1746_v45 = vpop.f32.mrf.mxu0 }
 0xa2b   :  { %v1753_v46 = vrot.slane %v1746_v45, %v4129_v47  ;;  %v1759_v52 = vrot.slane %v1746_v45, %v4131_v48 }
 0xa2c   :  { %v3475_v49 = vpop.f32.mrf.mxu0 }
 0xa2d   :  { %v1754_v50 = vmul.f32 %v1753_v46, %v4399_v62  ;;  %v1755_v51 = vmul.f32 %v1753_v46, %v4396_v60 }
 0xa2f   :  { %v1760_v53 = vadd.f32 %v1759_v52, %v1754_v50  ;;  %v1761_v55 = vadd.f32 %v1759_v52, %v1755_v51 }
 0xa31   :  { %1907 = vmatmul.mubr.f32.vlgmr.msra.gmra.mxu0 %v1760_v53  ;;  %3508 = vmatprep.mubr.f32.mxu1 %v1760_v53 }
 0xa32   :  { %3509 = vmatmul.mubr.f32.vlgmr.msra.gmra.mxu1 %v1761_v55  ;;  %1912 = vmatprep.mubr.f32.mxu0 %v3798_v27 }
 0xa33   :  { %3566 = vmatprep.mubr.msk.f32.mxu1 %vm3799_vm1, %v3798_v27 }
 0xa35   :  { %1913 = vmatmul.mubr.f32.gmra.mxu0 %v1761_v55 }
 0xa36   :  { %3523 = vmatprep.mubr.msk.f32.mxu0 %vm2007_vm6, %v2883_v61 }
 0xaf1   :  { %v1908_v62 = vpop.f32.mrf.mxu0 }
 0xaf2   :  { %v3510_v60 = vpop.f32.mrf.mxu1 }
 0xaf3   :  { %v1910_v63 = vpop.f32.mrf.mxu0  ;;  %3511 = vmatprep.subr.mxu0 %v3510_v60 }
 0xaf4   :  { %v1985_v0 = vpop.f32.mrf.mxu1  ;;  %3512 = vmatpush3.msra.mxu0 %v3510_v60 }
 0xaf5   :  { %v1914_v57 = vpop.f32.mrf.mxu0  ;;  %3513 = vmatprep.subr.mxu0 %v1985_v0 }
 0xaf6   :  { %3514 = vmatpush3.msra.mxu0 %v1985_v0 }
 0xaf7   :  { %v1916_v58 = vpop.f32.mrf.mxu0 }
 0xaf8   :  { %3515 = vmatprep.subr.mxu0 %v1916_v58 }
 0xaf9   :  { %3516 = vmatpush3.msra.mxu0 %v1916_v58 }
 0xafa   :  { %3517 = vmatprep.subr.mxu0 %v1910_v63 }
 0xafb   :  { %3518 = vmatpush3.msra.mxu0 %v1910_v63  ;;  %v2238_v63 = vld [vmem:[#allocation7 + $0x28] sm:$0xf] }
 0xafc   :  { %3519 = vmatprep.subr.mxu0 %v1914_v57  ;;  %3565 = vmatpush3.msk.msra.mxu1 %vm2243_vm7, %v2238_v63 }
 0xafd   :  { %3520 = vmatpush3.msra.mxu0 %v1914_v57  ;;  %3569 = vmatprep.subr.mxu1 %v3798_v27 }
 0xafe   :  { %3521 = vmatprep.subr.mxu0 %v1908_v62 }
 0xaff   :  { %3522 = vmatpush3.msra.mxu0 %v1908_v62 }
 0xb00   :  { %3524 = vmatmul.mubr.msk.f32.vlgmr.msra.gmra.mxu0 %vm2007_vm6, %v2884_v1  ;;  %3529 = vmatprep.subr.mxu0 %v3798_v27 }
 0xb01   :  { %3526 = vmatprep.mubr.msk.f32.mxu0 %vm2007_vm6, %v2887_v2  ;;  %3530 = vmatpush3.msra.mxu0 %v2147_v3 }
 0xb02   :  { %3531 = vmatprep.subr.mxu0 %v3798_v27 }
 0xb03   :  { %3532 = vmatpush3.msra.mxu0 %v2146_v5 }
 0xb04   :  { %3527 = vmatmul.mubr.msk.f32.gmra.mxu0 %vm2007_vm6, %v2888_v4  ;;  %3533 = vmatprep.subr.mxu0 %v3798_v27 }
 0xb05   :  { %3561 = vmatprep.mubr.msk.f32.mxu0 %vm3799_vm1, %v3798_v27  ;;  %3534 = vmatpush3.msra.mxu0 %v2145_v54  ;;  %v2225_v54 = vld [vmem:[#allocation7 + $0x20] sm:$0x3] }
 0xb06   :  { %3535 = vmatprep.subr.mxu0 %v3798_v27 }
 0xb07   :  { %3536 = vmatpush3.msra.mxu0 %v2144_v6 }
 0xb08   :  { %3537 = vmatprep.subr.mxu0 %v3798_v27 }
 0xb09   :  { %3538 = vmatpush3.msra.mxu0 %v2143_v7 }
 0xb0a   :  { %3539 = vmatprep.subr.mxu0 %v3798_v27 }
 0xb0b   :  { %3540 = vmatpush3.msra.mxu0 %v2142_v8 }
 0xb0c   :  { %3541 = vmatprep.subr.mxu0 %v3798_v27 }
 0xb0d   :  { %3542 = vmatpush3.msra.mxu0 %v2141_v9 }
 0xb0e   :  { %3543 = vmatprep.subr.mxu0 %v3798_v27 }
 0xb0f   :  { %3544 = vmatpush3.msra.mxu0 %v2140_v10 }
 0xb10   :  { %3545 = vmatprep.subr.mxu0 %v3798_v27 }
 0xb11   :  { %3546 = vmatpush3.msra.mxu0 %v2139_v11 }
 0xb12   :  { %3547 = vmatprep.subr.mxu0 %v3798_v27 }
 0xb13   :  { %3548 = vmatpush3.msra.mxu0 %v2138_v12  ;;  %v2337_v12 = vld [vmem:[%s4703_s13] sm:$0x3] }
 0xb14   :  { %3549 = vmatprep.subr.mxu0 %v3798_v27 }
 0xb15   :  { %3550 = vmatpush3.msra.mxu0 %v2137_v13  ;;  %v2426_v13 = vld [vmem:[%s4699_s9 + $0x78] sm:$0xff] }
 0xb16   :  { %3551 = vmatprep.subr.mxu0 %v3798_v27 }
 0xb17   :  { %3552 = vmatpush3.msra.mxu0 %v2136_v14  ;;  %v2425_v14 = vld [vmem:[%s4699_s9 + $0x70] sm:$0xff] }
 0xb18   :  { %3553 = vmatprep.subr.mxu0 %v3798_v27 }
 0xb19   :  { %3554 = vmatpush3.msra.mxu0 %v2135_v15  ;;  %v2423_v15 = vld [vmem:[%s4699_s9 + $0x60] sm:$0xff] }
 0xb1a   :  { %3555 = vmatprep.subr.mxu0 %v3798_v27 }
 0xb1b   :  { %3556 = vmatpush3.msra.mxu0 %v2134_v16  ;;  %v2422_v16 = vld [vmem:[%s4699_s9 + $0x58] sm:$0xff] }
 0xb1c   :  { %3557 = vmatprep.subr.mxu0 %v3798_v27 }
 0xb1d   :  { %3558 = vmatpush3.msra.mxu0 %v2133_v17  ;;  %v2421_v17 = vld [vmem:[%s4699_s9 + $0x50] sm:$0xff] }
 0xb1e   :  { %3559 = vmatprep.subr.mxu0 %v3798_v27 }
 0xb1f   :  { %3560 = vmatpush3.msra.mxu0 %v2132_v18  ;;  %v2420_v18 = vld [vmem:[%s4699_s9 + $0x48] sm:$0xff] }
 0xb20   :  { %3609 = vmatprep.subr.mxu0 %v3798_v27 }
 0xbc0   :  { %v3525_v20 = vpop.f32.mrf.mxu0 }
 0xbc1   :  { %v2092_v21 = vadd.f32 %v3525_v20, %v2659_v19  ;;  %v2418_v20 = vld [vmem:[%s4699_s9 + $0x38] sm:$0xff] }
 0xbc2   :  { %v2086_v22 = vpop.f32.mrf.mxu0 }
 0xbc3   :  { %v2087_v23 = vadd.f32 %v2659_v19, %v2086_v22  ;;  %v4566_v29 = vmax.f32 %v2092_v21, 0.0  ;;  %v2417_v21 = vld [vmem:[%s4699_s9 + $0x30] sm:$0xff]  ;;  %v2416_v22 = vld [vmem:[%s4699_s9 + $0x28] sm:$0xff] }
 0xbc4   :  { %v3528_v24 = vpop.f32.mrf.mxu0 }
 0xbc5   :  { %v4568_v25 = vmax.f32 %v2087_v23, 0.0  ;;  %v2102_v26 = vadd.f32 %v3528_v24, %v2659_v19  ;;  %v2119_v33 = vmul.f32 %v4566_v29, %v4566_v29  ;;  %v2415_v23 = vld [vmem:[%s4699_s9 + $0x20] sm:$0xff]  ;;  %v2414_v24 = vld [vmem:[%s4699_s9 + $0x18] sm:$0xff] }
 0xbc6   :  { %v2096_v30 = vpop.f32.mrf.mxu0 }
 0xbc7   :  { %v2118_v31 = vmul.f32 %v4568_v25, %v4568_v25  ;;  %v2097_v32 = vadd.f32 %v2659_v19, %v2096_v30  ;;  %v2109_v34 = vadd.f32 %v4566_v29, %v4568_v25  ;;  %v4576_v35 = vmax.f32 %v2102_v26, 0.0  ;;  %v2419_v19 = vld [vmem:[%s4699_s9 + $0x40] sm:$0xff]  ;;  %v2413_v26 = vld [vmem:[%s4699_s9 + $0x10] sm:$0xff]  ;;  %v2412_v30 = vld [vmem:[%s4699_s9 + $0x8] sm:$0xff] }
 0xbc9   :  { %v4578_v36 = vmax.f32 %v2097_v32, 0.0  ;;  %v2122_v37 = vadd.f32 %v2119_v33, %v2118_v31  ;;  %v2121_v40 = vmul.f32 %v4576_v35, %v4576_v35  ;;  %v2411_v31 = vld [vmem:[%s4699_s9] sm:$0xff] }
 0xbcb   :  { %v2110_v38 = vadd.f32 %v2109_v34, %v4578_v36  ;;  %v2120_v39 = vmul.f32 %v4578_v36, %v4578_v36 }
 0xbcd   :  { %v2111_v41 = vadd.f32 %v2110_v38, %v4576_v35  ;;  %v2123_v42 = vadd.f32 %v2122_v37, %v2120_v39 }
 0xbcf   :  { %v2112_v43 = vrot.slane %v2111_v41, 4  ;;  %v2124_v44 = vadd.f32 %v2123_v42, %v2121_v40 }
 0xbd1   :  { %v2113_v45 = vadd.f32 %v2112_v43, %v2111_v41  ;;  %v2125_v46 = vrot.slane %v2124_v44, 4 }
 0xbd3   :  { %v2114_v49 = vrot.slane %v2113_v45, 2  ;;  %v2126_v50 = vadd.f32 %v2125_v46, %v2124_v44 }
 0xbd5   :  { %v2115_v51 = vadd.f32 %v2114_v49, %v2113_v45  ;;  %v2127_v52 = vrot.slane %v2126_v50, 2 }
 0xbd7   :  { %v2116_v53 = vrot.slane %v2115_v51, 1  ;;  %v2128_v55 = vadd.f32 %v2127_v52, %v2126_v50 }
 0xbd9   :  { %v2129_v59 = vrot.slane %v2128_v55, 1  ;;  %v2117_v61 = vadd.f32 %v2116_v53, %v2115_v51 }
 0xbdb   :  { %v2130_v62 = vadd.f32 %v2129_v59, %v2128_v55 }
 0xbdd   :  { %v2131_v60 = vsel %vm497_vm2, %v2117_v61, %v2130_v62 }
 0xbde   :  { %3562 = vmatmul.mubr.f32.vlgmr.msra.gmra.mxu0 %v2131_v60 }
 0xbdf   :  { %3613 = vmatprep.mubr.msk.f32.mxu0 %vm3799_vm1, %v3798_v27 }
 0xc9e   :  { %v2214_v0 = vpop.f32.mrf.mxu0 }
 0xc9f   :  { %v2218_v57 = vmul.f32 0.001953125, %v2214_v0 }
 0xca0   :  { %v3563_v58 = vpop.f32.mrf.mxu0 }
 0xca1   :  { %v2219_v56 = vmul.f32 %v2218_v57, %v2218_v57 }
 0xca3   :  { %v2221_v1 = vrot.slane %v2219_v56, 7 }
 0xca5   :  { %v2223_v2 = vsub.f32 %v2218_v57, %v2221_v1 }
 0xca7   :  { %v2224_v3 = vmax.f32 %v2223_v2, 0.0 }
 0xca9   :  { %v2226_v4 = vadd.f32 1e-05, %v2224_v3 }
 0xcab   :  { %3637 = vrsqrt.f32 %v2226_v4 }
 0xcb8   :  { %v3638_v5 = vpop.eup %3637 }
 0xcb9   :  { %v2229_v6 = vrot.slane %v3638_v5, 1 }
 0xcbb   :  { %v2231_v7 = vmul.f32 %v2229_v6, %v2225_v54 }
 0xcbd   :  { %v2232_v8 = vmul.f32 %v2231_v7, %v2218_v57 }
 0xcbf   :  { %v2234_v9 = vrot.slane %v2232_v8, 7 }
 0xcc1   :  { %v2236_v10 = vsub.f32 %v2225_v54, %v2234_v9 }
 0xcc3   :  { %v2237_v11 = vsel %vm497_vm2, %v2231_v7, %v2236_v10 }
 0xcc4   :  { %3567 = vmatmul.mubr.msk.f32.vlgmr.msra.gmra.mxu1 %vm2239_vm8, %v2237_v11 }
 0xcc5   :  { %3570 = vmatpush3.msra.mxu1 %v4283_v28  ;;  %3571 = vmatprep.mubr.msk.f32.mxu1 %vm3799_vm1, %v3798_v27  ;;  %v2424_v28 = vld [vmem:[%s4699_s9 + $0x68] sm:$0xff]  ;;  %s3800_s9 = smov [#allocation9]  }
 0xcc6   :  { %3574 = vmatprep.subr.mxu1 %v3798_v27  ;;  %s2598_s25 = sshll.u32 %s3800_s9, 4  ;;  %s2599_s25 = int_to_ptr.vmem [resolvable:$true] %s2598_s25 }
 0xcc7   :  { %s3699_s7 = scalar_lea.vmem %s2599_s25, 256  ;;  %p3704_p2 = scmp.lt.s32.totalorder %s2599_s25, %s2599_s25 }
 0xcc8   :  { %3572 = vmatmul.mubr.msk.f32.vlgmr.msra.gmra.mxu1 %vm606_vm3, %v2337_v12  ;;  %p3700_p1 = scmp.ne.s32.totalorder %s2599_s25, %s3699_s7  ;;  %p3705_p3 = scmp.lt.s32.totalorder %s3699_s7, %s3699_s7 }
 0xcc9   :  { %3575 = vmatpush3.msra.mxu1 %v2426_v13  ;;  %3606 = vmatprep.mubr.msk.f32.mxu1 %vm3799_vm1, %v3798_v27 }
 0xcca   :  { %3576 = vmatprep.subr.mxu1 %v3798_v27  ;;  %p3706_p4 = por %p3705_p3, %p3704_p2 }
 0xccb   :  { %3577 = vmatpush3.msra.mxu1 %v2425_v14 }
 0xccc   :  { %3578 = vmatprep.subr.mxu1 %v3798_v27  ;;  %p3707_p5 = pnand %p3706_p4, %p3700_p1 }
 0xccd   :  { %3579 = vmatpush3.msra.mxu1 %v2424_v28 }
 0xcce   :  { %3580 = vmatprep.subr.mxu1 %v3798_v27 }
 0xccf   :  { %3581 = vmatpush3.msra.mxu1 %v2423_v15 }
 0xcd0   :  { %3582 = vmatprep.subr.mxu1 %v3798_v27 }
 0xcd1   :  { %3583 = vmatpush3.msra.mxu1 %v2422_v16 }
 0xcd2   :  { %3584 = vmatprep.subr.mxu1 %v3798_v27 }
 0xcd3   :  { %3585 = vmatpush3.msra.mxu1 %v2421_v17 }
 0xcd4   :  { %3586 = vmatprep.subr.mxu1 %v3798_v27 }
 0xcd5   :  { %3587 = vmatpush3.msra.mxu1 %v2420_v18 }
 0xcd6   :  { %3588 = vmatprep.subr.mxu1 %v3798_v27 }
 0xcd7   :  { %3589 = vmatpush3.msra.mxu1 %v2419_v19 }
 0xcd8   :  { %3590 = vmatprep.subr.mxu1 %v3798_v27 }
 0xcd9   :  { %3591 = vmatpush3.msra.mxu1 %v2418_v20 }
 0xcda   :  { %3592 = vmatprep.subr.mxu1 %v3798_v27 }
 0xcdb   :  { %3593 = vmatpush3.msra.mxu1 %v2417_v21 }
 0xcdc   :  { %3594 = vmatprep.subr.mxu1 %v3798_v27 }
 0xcdd   :  { %3595 = vmatpush3.msra.mxu1 %v2416_v22 }
 0xcde   :  { %3596 = vmatprep.subr.mxu1 %v3798_v27 }
 0xcdf   :  { %3597 = vmatpush3.msra.mxu1 %v2415_v23 }
 0xce0   :  { %3598 = vmatprep.subr.mxu1 %v3798_v27 }
 0xce1   :  { %3599 = vmatpush3.msra.mxu1 %v2414_v24 }
 0xce2   :  { %3600 = vmatprep.subr.mxu1 %v3798_v27 }
 0xce3   :  { %3601 = vmatpush3.msra.mxu1 %v2413_v26 }
 0xce4   :  { %3602 = vmatprep.subr.mxu1 %v3798_v27 }
 0xce5   :  { %3603 = vmatpush3.msra.mxu1 %v2412_v30 }
 0xce6   :  { %3604 = vmatprep.subr.mxu1 %v3798_v27 }
 0xce7   :  { %3605 = vmatpush3.msra.mxu1 %v2411_v31 }
 0xd84   :  { %v2313_v32 = vpop.f32.mrf.mxu1 }
 0xd85   :  { %v2320_v33 = vrot.slane %v2313_v32, %v4129_v47  ;;  %v2328_v34 = vrot.slane %v2313_v32, %v4131_v48  ;;  %v2501_v47 = vld [vmem:[#allocation7 + $0x70] sm:$0xff]  ;;  %v2500_v48 = vld [vmem:[#allocation7 + $0x68] sm:$0xff] }
 0xd86   :  { %v3568_v37 = vpop.f32.mrf.mxu1  ;;  %3610 = vmatpush3.msra.mxu0 %v2501_v47 }
 0xd87   :  { %v2321_v38 = vmul.f32 %v2320_v33, %v4568_v25  ;;  %v2322_v39 = vmul.f32 %v2320_v33, %v4566_v29  ;;  %v2323_v40 = vmul.f32 %v2320_v33, %v4578_v36  ;;  %v2324_v41 = vmul.f32 %v2320_v33, %v4576_v35  ;;  %3611 = vmatprep.subr.mxu0 %v3798_v27 }
 0xd88   :  { %v2407_v42 = vpop.f32.mrf.mxu1  ;;  %3612 = vmatpush3.msra.mxu0 %v2500_v48 }
 0xd89   :  { %v2329_v43 = vadd.f32 %v2328_v34, %v2321_v38  ;;  %v2330_v44 = vadd.f32 %v2328_v34, %v2322_v39  ;;  %v2331_v45 = vadd.f32 %v2328_v34, %v2323_v40  ;;  %v2332_v46 = vadd.f32 %v2328_v34, %v2324_v41  ;;  %3607 = vmatmul.mubr.f32.vlgmr.msra.gmra.mxu1 %v2407_v42 }
 0xd8a   :  { %v3573_v49 = vpop.f32.mrf.mxu1 }
 0xd8b   :  { %2333 = vst [vmem:[#allocation8] sm:$0xff] %v2329_v43  ;;  %2334 = vst [vmem:[#allocation8 + $0x8] sm:$0xff] %v2330_v44 }
 0xd8c   :  { %2335 = vst [vmem:[#allocation8 + $0x10] sm:$0xff] %v2331_v45  ;;  %2336 = vst [vmem:[#allocation8 + $0x18] sm:$0xff] %v2332_v46 }
 0xe49   :  { %v2493_v29 = vpop.f32.mrf.mxu1 }
 0xe4a   :  { %v2497_v25 = vmul.f32 0.25, %v2493_v29 }
 0xe4b   :  { %v3608_v35 = vpop.f32.mrf.mxu1 }
 0xe4c   :  { %3614 = vmatmul.mubr.msk.f32.vlgmr.msra.gmra.mxu0 %vm698_vm4, %v2497_v25  ;;  %2499 = vst.msk [vmem:[#allocation11] sm:$0x3] %vm2498_vm9, %v2497_v25 }
 0xe4d   :  { %3710 = shalt.err (!%p3707_p5)
}
 0xe4e   :  { %2604 = dma.vmem_to_hbm [thread:$0]  %s2599_s25, 256, %s4706_s16, [#allocation10], %s3796_s28, %s3796_s28, %s3797_s29  }
 0xe4f   :  { %s3719_s30 = scalar_lea.vmem %s2587_s11, 512  ;;  %p3724_p7 = scmp.lt.s32.totalorder %s2587_s11, %s2587_s11 }
 0xe50   :  { %p3720_p6 = scmp.ne.s32.totalorder %s2587_s11, %s3719_s30  ;;  %p3725_p8 = scmp.lt.s32.totalorder %s3719_s30, %s3719_s30 }
 0xe52   :  { %p3726_p9 = por %p3725_p8, %p3724_p7 }
 0xe54   :  { %p3727_p10 = pnand %p3726_p9, %p3720_p6 }
 0xe56   :  { %3730 = shalt.err (!%p3727_p10)
}
 0xe57   :  { %2592 = dma.vmem_to_hbm [thread:$0]  %s2587_s11, 512, %s4705_s15, [#allocation4], %s3796_s28, %s3796_s28, %s3797_s29  }
 0xe58   :  { %s3802_s23 = smov [#allocation11]  }
 0xe59   :  { %s2611_s19 = sshll.u32 %s3802_s23, 4  ;;  %s2612_s19 = int_to_ptr.vmem [resolvable:$true] %s2611_s19 }
 0xe5a   :  { %s3739_s20 = scalar_lea.vmem %s2612_s19, 32  ;;  %p3744_p12 = scmp.lt.s32.totalorder %s2612_s19, %s2612_s19 }
 0xe5b   :  { %p3740_p11 = scmp.ne.s32.totalorder %s2612_s19, %s3739_s20  ;;  %p3745_p13 = scmp.lt.s32.totalorder %s3739_s20, %s3739_s20 }
 0xe5d   :  { %p3746_p0 = por %p3745_p13, %p3744_p12 }
 0xe5f   :  { %p3747_p1 = pnand %p3746_p0, %p3740_p11 }
 0xe61   :  { %3750 = shalt.err (!%p3747_p1)
}
 0xe62   :  { %2614 = dma.vmem_to_hbm [thread:$0]  %s2612_s19, 32, %s4707_s17, [#allocation10]   ;;  %v2667_v27 = vld [vmem:[#allocation7 + $0x78] ss:$0 sm:$0xff] }
 0xe63   :  { %s3803_s3 = smov [#allocation12]  }
 0xe64   :  { %s2621_s6 = sshll.u32 %s3803_s3, 4  ;;  %s2622_s6 = int_to_ptr.vmem [resolvable:$true] %s2621_s6 }
 0xe65   :  { %s3759_s15 = scalar_lea.vmem %s2622_s6, 32  ;;  %p3764_p3 = scmp.lt.s32.totalorder %s2622_s6, %s2622_s6 }
 0xe66   :  { %p3760_p2 = scmp.ne.s32.totalorder %s2622_s6, %s3759_s15  ;;  %p3765_p4 = scmp.lt.s32.totalorder %s3759_s15, %s3759_s15 }
 0xe68   :  { %p3766_p5 = por %p3765_p4, %p3764_p3 }
 0xe6a   :  { %p3767_p6 = pnand %p3766_p5, %p3760_p2 }
 0xf0c   :  { %v2576_v36 = vpop.f32.mrf.mxu0 }
 0xf0d   :  { %v2577_v50 = vadd.f32 %v2667_v27, %v2576_v36 }
 0xf0e   :  { %v3615_v51 = vpop.f32.mrf.mxu0 }
 0xf0f   :  { %2580 = vst [vmem:[#allocation12] sm:$0x3] %v2577_v50 }
 0xf10   :  { %3770 = shalt.err (!%p3767_p6)
}
 0xf11   :  { %2624 = dma.vmem_to_hbm [thread:$0]  %s2622_s6, 32, %s4708_s18, [#allocation13]  }
 0xf12   :  { %3783 = dma.done.wait [#allocation4], 512  }
 0xf13   :  { %3784 = vsyncadd [#allocation4], 4294966784 }
 0xf14   :  { %3785 = dma.done.wait [#allocation10], 288  }
 0xf15   :  { %3786 = vsyncadd [#allocation10], 4294967008 }
 0xf16   :  { %3787 = dma.done.wait [#allocation13], 32  }
 0xf17   :  { %3788 = vsyncadd [#allocation13], 4294967264 }
 0xf18   :  { %2637 = vsyncpa [#allocation3], 1 }
 0xf19   :  { %2638 = vsyncpa [#allocation6], 1 }
 0xf1a   :  { %2639 = vsyncpa [#allocation4], 1 }
 0xf1b   :  { %2640 = vsyncpa [#allocation10], 1 }
 0xf1c   :  { %2641 = vsyncpa [#allocation13], 1 }

</bundles_post_ra>
